<compile_context>
chip_gen: v6e
topology: v6e:2x2x1
jax: 0.10.0
libtpu: 0.0.40
codegen_flags: <defaults>
</compile_context>

<pallas_src>
import functools

import jax
import jax.numpy as jnp
from jax.experimental import pallas as pl
from jax.experimental.pallas import tpu as pltpu


def _conv_lstm_kernel(comb_ref, c_ref, w_ref, b_ref, h_out_ref, c_out_ref,
                      acc_ref, *, TH, W, Ch, K):
    # comb_ref : [1, Hp, W, K*C]  bf16  height-padded width-im2col of cat(x, h)
    # c_ref    : [1, Ch, TH*W]    f32   cell-state tile (NCHW, spatial flat)
    # w_ref    : [K, K*C, 4*Ch]   bf16  one [K*C, 4*Ch] matrix per height tap
    # b_ref    : [1, 4*Ch]        f32
    # h_out_ref, c_out_ref : [1, Ch, TH*W]
    # acc_ref  : [TH*W, 4*Ch]     f32   VMEM accumulator
    t = pl.program_id(1)
    rows = TH * W
    C4 = 4 * Ch

    # Seed the accumulator with the conv bias (folds the bias add into init).
    acc_ref[...] = jnp.broadcast_to(b_ref[...], (rows, C4))

    row0 = t * TH
    for kh in range(K):  # K taps, each one fat bf16 MXU matmul, f32 accumulate
        win = comb_ref[0, pl.ds(row0 + kh, TH)]        # [TH, W, K*C] from VMEM
        win = win.reshape(rows, win.shape[-1])         # free (W % 8 == 0)
        acc_ref[...] += jnp.dot(win, w_ref[kh],
                                preferred_element_type=jnp.float32)

    # Single [TH*W, 4Ch] -> [4Ch, TH*W] transpose (XLU) so the gate math, the
    # cell state, and both stores are lane-dense (128-lane rows, unmasked vst).
    acc_t = jnp.transpose(acc_ref[...], (1, 0))        # [4*Ch, TH*W] f32

    i = jax.nn.sigmoid(acc_t[0 * Ch:1 * Ch])
    f = jax.nn.sigmoid(acc_t[1 * Ch:2 * Ch])
    o = jax.nn.sigmoid(acc_t[2 * Ch:3 * Ch])
    g = jnp.tanh(acc_t[3 * Ch:4 * Ch])

    c_prev = c_ref[0]                                  # [Ch, TH*W]
    c_next = f * c_prev + i * g
    h_next = o * jnp.tanh(c_next)

    h_out_ref[0] = h_next.astype(h_out_ref.dtype)
    c_out_ref[0] = c_next.astype(c_out_ref.dtype)


@functools.partial(jax.jit, static_argnames=("tile_h",))
def conv_lstm_cell(x, h, c, w, b, *, tile_h=8):
    """ConvLSTMCell forward. NCHW activations, OIHW weight (PyTorch layout)."""
    N, Cin, H, W = x.shape
    Ch = h.shape[1]
    K = w.shape[2]
    assert K % 2 == 1, "even filter_size diverges from SAME padding"
    p = K // 2
    C = Cin + Ch
    C4 = 4 * Ch
    Hp = H + 2 * p

    # Pick a row tile: block last dim (TH*W) must be a multiple of 128 or full.
    TH = tile_h
    if (H % TH != 0) or ((TH * W) % 128 != 0):
        TH = H

    # ---- wrapper-side glue (single im2col build; bf16 for the MXU path) ----
    xh = jnp.concatenate([jnp.transpose(x, (0, 2, 3, 1)),
                          jnp.transpose(h, (0, 2, 3, 1))], axis=-1)  # [N,H,W,C]
    xh_wp = jnp.pad(xh, ((0, 0), (0, 0), (p, p), (0, 0)))            # width pad
    cols = jnp.stack([xh_wp[:, :, kw:kw + W, :] for kw in range(K)],
                     axis=3)                                         # [N,H,W,K,C]
    comb = cols.reshape(N, H, W, K * C)
    comb = jnp.pad(comb, ((0, 0), (p, p), (0, 0), (0, 0)))           # height pad
    comb = comb.astype(jnp.bfloat16)                                 # [N,Hp,W,K*C]

    # OIHW -> HWIO -> [K, K*C, 4*Ch], middle axis ordered (kw, c) to match im2col.
    w_r = jnp.transpose(w, (2, 3, 1, 0)).reshape(K, K * C, C4).astype(jnp.bfloat16)
    b2 = b.reshape(1, C4).astype(jnp.float32)
    c_flat = c.reshape(N, Ch, H * W)                                 # free reshape

    kernel = functools.partial(_conv_lstm_kernel, TH=TH, W=W, Ch=Ch, K=K)

    h_flat, c_next_flat = pl.pallas_call(
        kernel,
        out_shape=(
            jax.ShapeDtypeStruct((N, Ch, H * W), x.dtype),
            jax.ShapeDtypeStruct((N, Ch, H * W), x.dtype),
        ),
        grid_spec=pltpu.PrefetchScalarGridSpec(
            num_scalar_prefetch=0,
            grid=(N, H // TH),
            in_specs=[
                # Full padded im2col image per batch; resident across row tiles.
                pl.BlockSpec((1, Hp, W, K * C), lambda n, t: (n, 0, 0, 0)),
                pl.BlockSpec((1, Ch, TH * W), lambda n, t: (n, 0, t)),
                pl.BlockSpec((K, K * C, C4), lambda n, t: (0, 0, 0)),
                pl.BlockSpec((1, C4), lambda n, t: (0, 0)),
            ],
            out_specs=[
                pl.BlockSpec((1, Ch, TH * W), lambda n, t: (n, 0, t)),
                pl.BlockSpec((1, Ch, TH * W), lambda n, t: (n, 0, t)),
            ],
            scratch_shapes=[pltpu.VMEM((TH * W, C4), jnp.float32)],
        ),
        compiler_params=pltpu.CompilerParams(
            dimension_semantics=("parallel", "parallel"),
            vmem_limit_bytes=32 * 1024 * 1024,
        ),
    )(comb, c_flat, w_r, b2)

    return (h_flat.reshape(N, Ch, H, W), c_next_flat.reshape(N, Ch, H, W))


def conv_lstm_cell_ref(x, h, c, w, b):
    """Pure-JAX reference mirroring the PyTorch forward (NCHW / OIHW)."""
    comb = jnp.concatenate([x, h], axis=1)
    out = jax.lax.conv_general_dilated(
        comb, w, window_strides=(1, 1), padding="SAME",
        dimension_numbers=("NCHW", "OIHW", "NCHW"))
    out = out + b.reshape(1, -1, 1, 1)
    cc_i, cc_f, cc_o, cc_g = jnp.split(out, 4, axis=1)
    i = jax.nn.sigmoid(cc_i)
    f = jax.nn.sigmoid(cc_f)
    o = jax.nn.sigmoid(cc_o)
    g = jnp.tanh(cc_g)
    c_next = f * c + i * g
    h_next = o * jnp.tanh(c_next)
    return h_next, c_next


if __name__ == "__main__":
    # Shapes consistent with the module: in_channel=4, num_hidden=32,
    # width=16, filter_size=5, stride=1, layer_norm=False (unused in forward).
    N, H, W = 2, 16, 16
    Cin, Ch, K = 4, 32, 5

    key = jax.random.PRNGKey(0)
    k1, k2, k3, k4, k5 = jax.random.split(key, 5)

    x = jax.random.normal(k1, (N, Cin, H, W), jnp.float32)
    h = jax.random.normal(k2, (N, Ch, H, W), jnp.float32)
    c = jax.random.normal(k3, (N, Ch, H, W), jnp.float32)
    w = jax.random.normal(k4, (4 * Ch, Cin + Ch, K, K), jnp.float32) * 0.05
    b = jax.random.normal(k5, (4 * Ch,), jnp.float32) * 0.05

    h_next, c_next = conv_lstm_cell(x, h, c, w, b)
    jax.block_until_ready((h_next, c_next))

    h_want, c_want = conv_lstm_cell_ref(x, h, c, w, b)
    # bf16 MXU operands with f32 accumulation -> loosened tolerance.
    assert jnp.allclose(h_next, h_want, atol=5e-2, rtol=5e-2), "h mismatch"
    assert jnp.allclose(c_next, c_want, atol=5e-2, rtol=5e-2), "c mismatch"

    print("KERNEL_OK")
</pallas_src>

<mosaic_0001>
module attributes {stable_mosaic.version = 11 : i64} {
  func.func @_conv_lstm_kernel(%arg0: i32, %arg1: i32, %arg2: memref<1x20x16x180xbf16, #tpu.memory_space<vmem>>, %arg3: memref<1x32x128xf32, #tpu.memory_space<vmem>>, %arg4: memref<5x180x128xbf16, #tpu.memory_space<vmem>>, %arg5: memref<1x128xf32, #tpu.memory_space<vmem>>, %arg6: memref<1x32x128xf32, #tpu.memory_space<vmem>>, %arg7: memref<1x32x128xf32, #tpu.memory_space<vmem>>, %arg8: memref<128x128xf32, #tpu.memory_space<vmem>>) attributes {dimension_semantics = [#tpu.dimension_semantics<parallel>, #tpu.dimension_semantics<parallel>], iteration_bounds = array<i64: 2, 2>, scalar_prefetch = 0 : i64, scratch_operands = 1 : i64, tpu.core_type = #tpu.core_type<tc>, window_params = [{transform_indices = @transform_0, window_bounds = array<i64: 1, 20, 16, 180>}, {transform_indices = @transform_1, window_bounds = array<i64: 1, 32, 128>}, {pipeline_mode = #tpu.pipeline_mode<synchronous>, transform_indices = @transform_2, window_bounds = array<i64: 5, 180, 128>}, {pipeline_mode = #tpu.pipeline_mode<synchronous>, transform_indices = @transform_3, window_bounds = array<i64: 1, 128>}, {transform_indices = @transform_4, window_bounds = array<i64: 1, 32, 128>}, {transform_indices = @transform_5, window_bounds = array<i64: 1, 32, 128>}]} {
    %c0 = arith.constant 0 : index
    %c0_0 = arith.constant 0 : index
    %0 = vector.load %arg5[%c0, %c0_0] : memref<1x128xf32, #tpu.memory_space<vmem>>, vector<1x128xf32>
    %1 = vector.shape_cast %0 : vector<1x128xf32> to vector<1x128xf32>
    %2 = vector.broadcast %1 : vector<1x128xf32> to vector<128x128xf32>
    %c0_1 = arith.constant 0 : index
    %c0_2 = arith.constant 0 : index
    %3 = vector.load %arg8[%c0_1, %c0_2] : memref<128x128xf32, #tpu.memory_space<vmem>>, vector<128x128xf32>
    tpu.vector_store %arg8[%c0_1, %c0_2], %2 {strides = array<i32>} : memref<128x128xf32, #tpu.memory_space<vmem>>, vector<128x128xf32>,
    %c8_i32 = arith.constant 8 : i32
    %4 = arith.muli %arg1, %c8_i32 : i32
    %c0_i32 = arith.constant 0 : i32
    %5 = arith.addi %4, %c0_i32 : i32
    %c0_3 = arith.constant 0 : index
    %6 = arith.index_cast %5 : i32 to index
    %c0_4 = arith.constant 0 : index
    %c0_5 = arith.constant 0 : index
    %7 = vector.load %arg2[%c0_3, %6, %c0_4, %c0_5] : memref<1x20x16x180xbf16, #tpu.memory_space<vmem>>, vector<1x8x16x180xbf16>
    %8 = vector.shape_cast %7 : vector<1x8x16x180xbf16> to vector<8x16x180xbf16>
    %9 = vector.shape_cast %8 : vector<8x16x180xbf16> to vector<128x180xbf16>
    %c0_6 = arith.constant 0 : index
    %c0_7 = arith.constant 0 : index
    %10 = vector.load %arg8[%c0_6, %c0_7] : memref<128x128xf32, #tpu.memory_space<vmem>>, vector<128x128xf32>
    %c0_8 = arith.constant 0 : index
    %c0_9 = arith.constant 0 : index
    %c0_10 = arith.constant 0 : index
    %11 = vector.load %arg4[%c0_8, %c0_9, %c0_10] : memref<5x180x128xbf16, #tpu.memory_space<vmem>>, vector<1x180x128xbf16>
    %12 = vector.shape_cast %11 : vector<1x180x128xbf16> to vector<180x128xbf16>
    %cst = arith.constant dense<0.000000e+00> : vector<128x128xf32>
    %13 = tpu.matmul %9, %12, %cst {dimension_numbers = #tpu.dot_dimension_numbers<[1], [0], [0], [1], [0, 0, 1, 1], [], []>} : vector<128x180xbf16>, vector<180x128xbf16>, vector<128x128xf32> -> vector<128x128xf32>
    %14 = arith.addf %10, %13 : vector<128x128xf32>
    %c0_11 = arith.constant 0 : index
    %c0_12 = arith.constant 0 : index
    %15 = vector.load %arg8[%c0_11, %c0_12] : memref<128x128xf32, #tpu.memory_space<vmem>>, vector<128x128xf32>
    tpu.vector_store %arg8[%c0_11, %c0_12], %14 {strides = array<i32>} : memref<128x128xf32, #tpu.memory_space<vmem>>, vector<128x128xf32>,
    %c1_i32 = arith.constant 1 : i32
    %16 = arith.addi %4, %c1_i32 : i32
    %c0_13 = arith.constant 0 : index
    %17 = arith.index_cast %16 : i32 to index
    %c0_14 = arith.constant 0 : index
    %c0_15 = arith.constant 0 : index
    %18 = vector.load %arg2[%c0_13, %17, %c0_14, %c0_15] : memref<1x20x16x180xbf16, #tpu.memory_space<vmem>>, vector<1x8x16x180xbf16>
    %19 = vector.shape_cast %18 : vector<1x8x16x180xbf16> to vector<8x16x180xbf16>
    %20 = vector.shape_cast %19 : vector<8x16x180xbf16> to vector<128x180xbf16>
    %c0_16 = arith.constant 0 : index
    %c0_17 = arith.constant 0 : index
    %21 = vector.load %arg8[%c0_16, %c0_17] : memref<128x128xf32, #tpu.memory_space<vmem>>, vector<128x128xf32>
    %c1 = arith.constant 1 : index
    %c0_18 = arith.constant 0 : index
    %c0_19 = arith.constant 0 : index
    %22 = vector.load %arg4[%c1, %c0_18, %c0_19] : memref<5x180x128xbf16, #tpu.memory_space<vmem>>, vector<1x180x128xbf16>
    %23 = vector.shape_cast %22 : vector<1x180x128xbf16> to vector<180x128xbf16>
    %cst_20 = arith.constant dense<0.000000e+00> : vector<128x128xf32>
    %24 = tpu.matmul %20, %23, %cst_20 {dimension_numbers = #tpu.dot_dimension_numbers<[1], [0], [0], [1], [0, 0, 1, 1], [], []>} : vector<128x180xbf16>, vector<180x128xbf16>, vector<128x128xf32> -> vector<128x128xf32>
    %25 = arith.addf %21, %24 : vector<128x128xf32>
    %c0_21 = arith.constant 0 : index
    %c0_22 = arith.constant 0 : index
    %26 = vector.load %arg8[%c0_21, %c0_22] : memref<128x128xf32, #tpu.memory_space<vmem>>, vector<128x128xf32>
    tpu.vector_store %arg8[%c0_21, %c0_22], %25 {strides = array<i32>} : memref<128x128xf32, #tpu.memory_space<vmem>>, vector<128x128xf32>,
    %c2_i32 = arith.constant 2 : i32
    %27 = arith.addi %4, %c2_i32 : i32
    %c0_23 = arith.constant 0 : index
    %28 = arith.index_cast %27 : i32 to index
    %c0_24 = arith.constant 0 : index
    %c0_25 = arith.constant 0 : index
    %29 = vector.load %arg2[%c0_23, %28, %c0_24, %c0_25] : memref<1x20x16x180xbf16, #tpu.memory_space<vmem>>, vector<1x8x16x180xbf16>
    %30 = vector.shape_cast %29 : vector<1x8x16x180xbf16> to vector<8x16x180xbf16>
    %31 = vector.shape_cast %30 : vector<8x16x180xbf16> to vector<128x180xbf16>
    %c0_26 = arith.constant 0 : index
    %c0_27 = arith.constant 0 : index
    %32 = vector.load %arg8[%c0_26, %c0_27] : memref<128x128xf32, #tpu.memory_space<vmem>>, vector<128x128xf32>
    %c2 = arith.constant 2 : index
    %c0_28 = arith.constant 0 : index
    %c0_29 = arith.constant 0 : index
    %33 = vector.load %arg4[%c2, %c0_28, %c0_29] : memref<5x180x128xbf16, #tpu.memory_space<vmem>>, vector<1x180x128xbf16>
    %34 = vector.shape_cast %33 : vector<1x180x128xbf16> to vector<180x128xbf16>
    %cst_30 = arith.constant dense<0.000000e+00> : vector<128x128xf32>
    %35 = tpu.matmul %31, %34, %cst_30 {dimension_numbers = #tpu.dot_dimension_numbers<[1], [0], [0], [1], [0, 0, 1, 1], [], []>} : vector<128x180xbf16>, vector<180x128xbf16>, vector<128x128xf32> -> vector<128x128xf32>
    %36 = arith.addf %32, %35 : vector<128x128xf32>
    %c0_31 = arith.constant 0 : index
    %c0_32 = arith.constant 0 : index
    %37 = vector.load %arg8[%c0_31, %c0_32] : memref<128x128xf32, #tpu.memory_space<vmem>>, vector<128x128xf32>
    tpu.vector_store %arg8[%c0_31, %c0_32], %36 {strides = array<i32>} : memref<128x128xf32, #tpu.memory_space<vmem>>, vector<128x128xf32>,
    %c3_i32 = arith.constant 3 : i32
    %38 = arith.addi %4, %c3_i32 : i32
    %c0_33 = arith.constant 0 : index
    %39 = arith.index_cast %38 : i32 to index
    %c0_34 = arith.constant 0 : index
    %c0_35 = arith.constant 0 : index
    %40 = vector.load %arg2[%c0_33, %39, %c0_34, %c0_35] : memref<1x20x16x180xbf16, #tpu.memory_space<vmem>>, vector<1x8x16x180xbf16>
    %41 = vector.shape_cast %40 : vector<1x8x16x180xbf16> to vector<8x16x180xbf16>
    %42 = vector.shape_cast %41 : vector<8x16x180xbf16> to vector<128x180xbf16>
    %c0_36 = arith.constant 0 : index
    %c0_37 = arith.constant 0 : index
    %43 = vector.load %arg8[%c0_36, %c0_37] : memref<128x128xf32, #tpu.memory_space<vmem>>, vector<128x128xf32>
    %c3 = arith.constant 3 : index
    %c0_38 = arith.constant 0 : index
    %c0_39 = arith.constant 0 : index
    %44 = vector.load %arg4[%c3, %c0_38, %c0_39] : memref<5x180x128xbf16, #tpu.memory_space<vmem>>, vector<1x180x128xbf16>
    %45 = vector.shape_cast %44 : vector<1x180x128xbf16> to vector<180x128xbf16>
    %cst_40 = arith.constant dense<0.000000e+00> : vector<128x128xf32>
    %46 = tpu.matmul %42, %45, %cst_40 {dimension_numbers = #tpu.dot_dimension_numbers<[1], [0], [0], [1], [0, 0, 1, 1], [], []>} : vector<128x180xbf16>, vector<180x128xbf16>, vector<128x128xf32> -> vector<128x128xf32>
    %47 = arith.addf %43, %46 : vector<128x128xf32>
    %c0_41 = arith.constant 0 : index
    %c0_42 = arith.constant 0 : index
    %48 = vector.load %arg8[%c0_41, %c0_42] : memref<128x128xf32, #tpu.memory_space<vmem>>, vector<128x128xf32>
    tpu.vector_store %arg8[%c0_41, %c0_42], %47 {strides = array<i32>} : memref<128x128xf32, #tpu.memory_space<vmem>>, vector<128x128xf32>,
    %c4_i32 = arith.constant 4 : i32
    %49 = arith.addi %4, %c4_i32 : i32
    %c0_43 = arith.constant 0 : index
    %50 = arith.index_cast %49 : i32 to index
    %c0_44 = arith.constant 0 : index
    %c0_45 = arith.constant 0 : index
    %51 = vector.load %arg2[%c0_43, %50, %c0_44, %c0_45] : memref<1x20x16x180xbf16, #tpu.memory_space<vmem>>, vector<1x8x16x180xbf16>
    %52 = vector.shape_cast %51 : vector<1x8x16x180xbf16> to vector<8x16x180xbf16>
    %53 = vector.shape_cast %52 : vector<8x16x180xbf16> to vector<128x180xbf16>
    %c0_46 = arith.constant 0 : index
    %c0_47 = arith.constant 0 : index
    %54 = vector.load %arg8[%c0_46, %c0_47] : memref<128x128xf32, #tpu.memory_space<vmem>>, vector<128x128xf32>
    %c4 = arith.constant 4 : index
    %c0_48 = arith.constant 0 : index
    %c0_49 = arith.constant 0 : index
    %55 = vector.load %arg4[%c4, %c0_48, %c0_49] : memref<5x180x128xbf16, #tpu.memory_space<vmem>>, vector<1x180x128xbf16>
    %56 = vector.shape_cast %55 : vector<1x180x128xbf16> to vector<180x128xbf16>
    %cst_50 = arith.constant dense<0.000000e+00> : vector<128x128xf32>
    %57 = tpu.matmul %53, %56, %cst_50 {dimension_numbers = #tpu.dot_dimension_numbers<[1], [0], [0], [1], [0, 0, 1, 1], [], []>} : vector<128x180xbf16>, vector<180x128xbf16>, vector<128x128xf32> -> vector<128x128xf32>
    %58 = arith.addf %54, %57 : vector<128x128xf32>
    %c0_51 = arith.constant 0 : index
    %c0_52 = arith.constant 0 : index
    %59 = vector.load %arg8[%c0_51, %c0_52] : memref<128x128xf32, #tpu.memory_space<vmem>>, vector<128x128xf32>
    tpu.vector_store %arg8[%c0_51, %c0_52], %58 {strides = array<i32>} : memref<128x128xf32, #tpu.memory_space<vmem>>, vector<128x128xf32>,
    %c0_53 = arith.constant 0 : index
    %c0_54 = arith.constant 0 : index
    %60 = vector.load %arg8[%c0_53, %c0_54] : memref<128x128xf32, #tpu.memory_space<vmem>>, vector<128x128xf32>
    %61 = tpu.transpose %60, [1, 0] : vector<128x128xf32> -> vector<128x128xf32>
    %62 = vector.extract_strided_slice %61 {offsets = [0, 0], sizes = [32, 128], strides = [1, 1]} : vector<128x128xf32> to vector<32x128xf32>
    %63 = arith.negf %62 : vector<32x128xf32>
    %64 = math.exp %63 : vector<32x128xf32>
    %cst_55 = arith.constant 1.000000e+00 : f32
    %65 = vector.broadcast %cst_55 : f32 to vector<32x128xf32>
    %66 = arith.addf %65, %64 : vector<32x128xf32>
    %67 = arith.divf %65, %66 : vector<32x128xf32>
    %68 = vector.extract_strided_slice %61 {offsets = [32, 0], sizes = [32, 128], strides = [1, 1]} : vector<128x128xf32> to vector<32x128xf32>
    %69 = arith.negf %68 : vector<32x128xf32>
    %70 = math.exp %69 : vector<32x128xf32>
    %cst_56 = arith.constant 1.000000e+00 : f32
    %71 = vector.broadcast %cst_56 : f32 to vector<32x128xf32>
    %72 = arith.addf %71, %70 : vector<32x128xf32>
    %73 = arith.divf %71, %72 : vector<32x128xf32>
    %74 = vector.extract_strided_slice %61 {offsets = [64, 0], sizes = [32, 128], strides = [1, 1]} : vector<128x128xf32> to vector<32x128xf32>
    %75 = arith.negf %74 : vector<32x128xf32>
    %76 = math.exp %75 : vector<32x128xf32>
    %cst_57 = arith.constant 1.000000e+00 : f32
    %77 = vector.broadcast %cst_57 : f32 to vector<32x128xf32>
    %78 = arith.addf %77, %76 : vector<32x128xf32>
    %79 = arith.divf %77, %78 : vector<32x128xf32>
    %80 = vector.extract_strided_slice %61 {offsets = [96, 0], sizes = [32, 128], strides = [1, 1]} : vector<128x128xf32> to vector<32x128xf32>
    %81 = math.tanh %80 : vector<32x128xf32>
    %c0_58 = arith.constant 0 : index
    %c0_59 = arith.constant 0 : index
    %c0_60 = arith.constant 0 : index
    %82 = vector.load %arg3[%c0_58, %c0_59, %c0_60] : memref<1x32x128xf32, #tpu.memory_space<vmem>>, vector<1x32x128xf32>
    %83 = vector.shape_cast %82 : vector<1x32x128xf32> to vector<32x128xf32>
    %84 = arith.mulf %73, %83 : vector<32x128xf32>
    %85 = arith.mulf %67, %81 : vector<32x128xf32>
    %86 = arith.addf %84, %85 : vector<32x128xf32>
    %87 = math.tanh %86 : vector<32x128xf32>
    %88 = arith.mulf %79, %87 : vector<32x128xf32>
    %c0_61 = arith.constant 0 : index
    %c0_62 = arith.constant 0 : index
    %c0_63 = arith.constant 0 : index
    %89 = vector.load %arg6[%c0_61, %c0_62, %c0_63] : memref<1x32x128xf32, #tpu.memory_space<vmem>>, vector<1x32x128xf32>
    %90 = vector.shape_cast %89 : vector<1x32x128xf32> to vector<32x128xf32>
    %91 = vector.shape_cast %88 : vector<32x128xf32> to vector<1x32x128xf32>
    tpu.vector_store %arg6[%c0_61, %c0_62, %c0_63], %91 {strides = array<i32>} : memref<1x32x128xf32, #tpu.memory_space<vmem>>, vector<1x32x128xf32>,
    %c0_64 = arith.constant 0 : index
    %c0_65 = arith.constant 0 : index
    %c0_66 = arith.constant 0 : index
    %92 = vector.load %arg7[%c0_64, %c0_65, %c0_66] : memref<1x32x128xf32, #tpu.memory_space<vmem>>, vector<1x32x128xf32>
    %93 = vector.shape_cast %92 : vector<1x32x128xf32> to vector<32x128xf32>
    %94 = vector.shape_cast %86 : vector<32x128xf32> to vector<1x32x128xf32>
    tpu.vector_store %arg7[%c0_64, %c0_65, %c0_66], %94 {strides = array<i32>} : memref<1x32x128xf32, #tpu.memory_space<vmem>>, vector<1x32x128xf32>,
    return
  }
  func.func @transform_0(%arg0: i32, %arg1: i32) -> (i32, i32, i32, i32) {
    %c0_i32 = arith.constant 0 : i32
    %c0_i32_0 = arith.constant 0 : i32
    %c0_i32_1 = arith.constant 0 : i32
    %c0_i32_2 = arith.constant 0 : i32
    return %arg0, %c0_i32, %c0_i32_0, %c0_i32_1 : i32, i32, i32, i32
  }
  func.func @transform_1(%arg0: i32, %arg1: i32) -> (i32, i32, i32) {
    %c0_i32 = arith.constant 0 : i32
    %c0_i32_0 = arith.constant 0 : i32
    return %arg0, %c0_i32, %arg1 : i32, i32, i32
  }
  func.func @transform_2(%arg0: i32, %arg1: i32) -> (i32, i32, i32) {
    %c0_i32 = arith.constant 0 : i32
    %c0_i32_0 = arith.constant 0 : i32
    %c0_i32_1 = arith.constant 0 : i32
    %c0_i32_2 = arith.constant 0 : i32
    return %c0_i32, %c0_i32_0, %c0_i32_1 : i32, i32, i32
  }
  func.func @transform_3(%arg0: i32, %arg1: i32) -> (i32, i32) {
    %c0_i32 = arith.constant 0 : i32
    %c0_i32_0 = arith.constant 0 : i32
    %c0_i32_1 = arith.constant 0 : i32
    return %c0_i32, %c0_i32_0 : i32, i32
  }
  func.func @transform_4(%arg0: i32, %arg1: i32) -> (i32, i32, i32) {
    %c0_i32 = arith.constant 0 : i32
    %c0_i32_0 = arith.constant 0 : i32
    return %arg0, %c0_i32, %arg1 : i32, i32, i32
  }
  func.func @transform_5(%arg0: i32, %arg1: i32) -> (i32, i32, i32) {
    %c0_i32 = arith.constant 0 : i32
    %c0_i32_0 = arith.constant 0 : i32
    return %arg0, %c0_i32, %arg1 : i32, i32, i32
  }
}

</mosaic_0001>

<bundles_post_ra>
// kernel: conv_lstm_cell.1
= control target key start
LH: loop header
LB: loop body
LE: loop exit
PB: predicated region body
PF: predicated region fallthrough
CT: control target
= control target key end

     0   :  { %s3238_s18 = smov 0   ;;  %s3240_s19 = smov 0   ;;  %s3943_s0 = inlined_call_operand.vmem [shape: bf16[2,20,16,180], index: 0, kind: input, shape index: {}]   ;;  %s3944_s1 = inlined_call_operand.vmem [shape: f32[2,32,256], index: 1, kind: input, shape index: {}]   ;;  %s3945_s2 = inlined_call_operand.vmem [shape: bf16[5,180,128], index: 2, kind: input, shape index: {}]   ;;  %s3946_s3 = inlined_call_operand.vmem [shape: f32[1,128], index: 3, kind: input, shape index: {}]   ;;  %s3947_s4 = inlined_call_operand.vmem [shape: f32[2,32,256], index: 4, kind: output, shape index: {0}]   ;;  %s3948_s5 = inlined_call_operand.vmem [shape: f32[2,32,256], index: 5, kind: output, shape index: {1}]  }
   0x1   :  { %s3242_s20 = smov 0   ;;  %s3244_s21 = smov 0  }
   0x2   :  { %s3246_s22 = smov 0   ;;  %s3248_s23 = smov 0  }
   0x3   :  { %s3250_s24 = smov 0  }
   0x4 LB: > { %s25_s25 = sadd.s32 1, %s3197_s22  ;;  %s28_s26 = sadd.s32 1, %s3201_s23  ;;  %s3205_s24 = sphi %s3250_s24, %s16_s24   ;;  %s3201_s23 = sphi %s3248_s23, %s3955_s23   ;;  %s3197_s22 = sphi %s3246_s22, %s3954_s22   ;;  %s3193_s21 = sphi %s3244_s21, %s3953_s21   ;;  %s3189_s20 = sphi %s3242_s20, %s3952_s20   ;;  %s3185_s19 = sphi %s3240_s19, %s3951_s19   ;;  %s3181_s18 = sphi %s3238_s18, %s3950_s18  }
   0x5   : > { %p26_p0 = scmp.ge.s32.totalorder %s25_s25, 2  ;;  %s2523_s27 = sadd.s32 4294967295, %s3205_s24  }
   0x6   : > { %p70_p1 = scmp.ne.s32.totalorder %s3185_s19, %s3181_s18  ;;  %p71_p2 = scmp.eq.s32.totalorder %s3205_s24, 0 }
   0x7   : > { %s3957_s25 = smov (%p26_p0, %s25_s25), 0  ;;  %s3959_s26 = smov (!%p26_p0, %s28_s26), %s3201_s23 }
   0x8   : > { %p30_p3 = scmp.ge.s32.totalorder %s3959_s26, 2  ;;  %p144_p4 = scmp.eq.s32.totalorder %s2523_s27, 3 }
   0x9   : > { %s59_s28 = ssub.s32 %s3197_s22, %s3957_s25  ;;  %p72_p5 = por %p71_p2, %p70_p1 }
   0xa   : > { %s3961_s26 = smov (%p30_p3, %s3959_s26), 0  ;;  %p3286_p6 = por %p144_p4, %p70_p1 }
   0xb   : > { %s58_s30 = ssub.s32 %s3201_s23, %s3961_s26  ;;  %s63_s7 = sadd.s32 1, %s3185_s19 }
   0xc   : > { %s60_s6 = sor.u32 %s59_s28, %s58_s30  ;;  %p2526_p8 = scmp.ge.s32.totalorder %s3205_s24, 4 }
   0xd   : > { %p61_p7 = scmp.eq.s32.totalorder %s60_s6, 0 }
   0xe   : > { %200 = sbr.rel (%p2526_p8) target bundleno = 27 (0x1b), region = 24 }
   0xf   : > { %s3294_s8 = scalar_select %p61_p7, %s3185_s19, %s63_s7  }
  0x13   : > { %211 = sbr.rel (!%p72_p5) target bundleno = 27 (0x1b), region = 32  ;;  %s213_s9 = sand.u32 (%p72_p5), 1, %s3185_s19  }
  0x14   : > { %s2528_s10 = sshll.u32 (%p72_p5), %s3201_s23, 3  ;;  %s2527_s11 = sshll.u32 (%p72_p5), %s213_s9, 5 }
  0x15   : > { %s217_s12 = sadd.s32 (%p72_p5), %s3197_s22, %s2528_s10  ;;  %s215_s17 = scalar_lea.vmem (%p72_p5), [#allocation3], %s2527_s11 }
  0x16   : > { %s2529_s13 = sshll.u32 (%p72_p5), %s217_s12, 3 }
  0x17   : > { %s219_s16 = scalar_lea.vmem (%p72_p5), %s3944_s1, %s2529_s13 }
  0x18   : > { %v254_v0 = vld [vmem:[%s219_s16] sm:$0xff]  ;;  %v256_v1 = vld [vmem:[%s219_s16 + $0x10] sm:$0xff] }
  0x19   : > { %v258_v2 = vld [vmem:[%s219_s16 + $0x20] sm:$0xff]  ;;  %255 = vst [vmem:[%s215_s17] sm:$0xff] %v254_v0  ;;  %257 = vst [vmem:[%s215_s17 + $0x8] sm:$0xff] %v256_v1  ;;  %v260_v3 = vld [vmem:[%s219_s16 + $0x30] sm:$0xff] }
  0x1a   : > { %259 = vst [vmem:[%s215_s17 + $0x10] sm:$0xff] %v258_v2  ;;  %261 = vst [vmem:[%s215_s17 + $0x18] sm:$0xff] %v260_v3 }
  0x1b PF: > { %p2530_p9 = scmp.ge.s32.totalorder %s3205_s24, 1  ;;  %p266_p10 = scmp.lt.s32.totalorder %s3205_s24, 5 }
  0x1d   : > { %p267_p11 = pnand %p2530_p9, %p266_p10 }
  0x1e   : > { %p308_p12 = scmp.lt.s32.totalorder (!%p267_p11), %s3193_s21, 1  ;;  %s2904_s17 = sshll.u32 (!%p267_p11), %s3189_s20, 7 }
  0x1f   : > { %270 = sbr.rel (%p267_p11) target bundleno = 642 (0x282), region = 70 }
  0x24   : > { %v2991_v4 = vld [vmem:[%s3945_s2 + $0x38] sm:$0xff]   ;;  %v3207_v5 = vmov 0   ;;  %v2993_v7 = vld [vmem:[%s3945_s2 + $0x30] sm:$0xff]   ;;  %v2995_v9 = vld [vmem:[%s3945_s2 + $0x28] sm:$0xff]   ;;  %s309_s27 = scalar_select %p308_p12, %s3193_s21, 1  ;;  %vm537_vm0 = vcmask 424960  }
  0x25   : > { %566 = vmatprep.subr.bf16.mxu0 %v3207_v5  ;;  %923 = vmatprep.subr.bf16.mxu1 %v3207_v5  ;;  %v2992_v6 = vld [vmem:[%s3945_s2 + $0x94] sm:$0xff]   ;;  %v2994_v8 = vld [vmem:[%s3945_s2 + $0x8c] sm:$0xff]   ;;  %v2996_v10 = vld [vmem:[%s3945_s2 + $0x84] sm:$0xff]   ;;  %vm562_vm1 = vcmask 1041408  }
  0x26   : > { %567 = vmatpush1.bf16.msra.mxu0 %v2991_v4  ;;  %924 = vmatpush1.bf16.msra.mxu1 %v2992_v6  ;;  %v2997_v11 = vld [vmem:[%s3945_s2 + $0x20] sm:$0xff]   ;;  %v2999_v13 = vld [vmem:[%s3945_s2 + $0x18] sm:$0xff]   ;;  %s2933_s9 = smul.u32 320, %s309_s27  ;;  %v3001_v15 = vld [vmem:[%s3945_s2 + $0x10] sm:$0xff]  }
  0x27   : > { %568 = vmatprep.subr.bf16.mxu0 %v3207_v5  ;;  %925 = vmatprep.subr.bf16.mxu1 %v3207_v5  ;;  %v2998_v12 = vld [vmem:[%s3945_s2 + $0x7c] sm:$0xff]   ;;  %v3000_v14 = vld [vmem:[%s3945_s2 + $0x74] sm:$0xff]   ;;  %v3002_v16 = vld [vmem:[%s3945_s2 + $0x6c] sm:$0xff]  }
  0x28   : > { %s312_s16 = scalar_lea.vmem %s3943_s0, %s2933_s9  ;;  %v3003_v17 = vld [vmem:[%s3945_s2 + $0x8] sm:$0xff]   ;;  %v3005_v19 = vld [vmem:[%s3945_s2] sm:$0xff]   ;;  %v3007_v21 = vld [vmem:[%s3945_s2 + $0x58] ss:$0 sps:$4 sm:$0x33]  }
  0x29   : > { %s3359_s30 = scalar_lea.vmem %s312_s16, %s2904_s17  ;;  %v3004_v18 = vld [vmem:[%s3945_s2 + $0x64] sm:$0xff]   ;;  %v3006_v23 = vld [vmem:[%s3945_s2 + $0x5c] sm:$0xff]   ;;  %v3008_v24 = vld [vmem:[%s3945_s2 + $0xb4] ss:$0 sps:$4 sm:$0x33]   ;;  %v564_v25 = vsel %vm562_vm1, %v3007_v21, 0 }
  0x2a   : > { %569 = vmatpush1.bf16.msra.mxu0 %v2993_v7  ;;  %926 = vmatpush1.bf16.msra.mxu1 %v2994_v8  ;;  %v3017_v20 = vld [vmem:[%s3359_s30 + $0x4] ss:$8 sps:$4 sm:$0xff]   ;;  %v3020_v22 = vld [vmem:[%s3359_s30 + $0x14] ss:$8 sps:$4 sm:$0xff]   ;;  %v921_v26 = vsel %vm562_vm1, %v3008_v24, 0  ;;  %s2897_s17 = sshll.u32 (%p3286_p6), %s3193_s21, 3 }
  0x2b   : > { %570 = vmatprep.subr.bf16.mxu0 %v3207_v5  ;;  %927 = vmatprep.subr.bf16.mxu1 %v3207_v5  ;;  %v3009_v27 = vld [vmem:[%s3945_s2 + $0x50] sm:$0xff]   ;;  %v3011_v29 = vld [vmem:[%s3945_s2 + $0x48] sm:$0xff]   ;;  %v3013_v31 = vld [vmem:[%s3945_s2 + $0x40] sm:$0xff]   ;;  %s2291_s27 = sadd.s32 (%p3286_p6), %s3189_s20, %s2897_s17 }
  0x2c   : > { %2567 = vmatprep.mubr.msk.bf16.mxu0 %vm537_vm0, %v3017_v20  ;;  %2644 = vmatprep.mubr.msk.bf16.mxu1 %vm537_vm0, %v3020_v22  ;;  %v3010_v28 = vld [vmem:[%s3945_s2 + $0xac] sm:$0xff]   ;;  %v3012_v30 = vld [vmem:[%s3945_s2 + $0xa4] sm:$0xff]   ;;  %v3014_v32 = vld [vmem:[%s3945_s2 + $0x9c] sm:$0xff]   ;;  %s2898_s28 = sshll.u32 (%p3286_p6), %s2291_s27, 3 }
  0x2d   : > { %v3015_v33 = vld [vmem:[%s3359_s30] ss:$8 sps:$4 sm:$0xff]   ;;  %v3018_v34 = vld [vmem:[%s3359_s30 + $0x10] ss:$8 sps:$4 sm:$0xff]   ;;  %v3422_v36 = vld [vmem:[%s3359_s30 + $0x24] ss:$8 sps:$4 sm:$0xff]   ;;  %s2293_s9 = scalar_lea.vmem (%p3286_p6), %s3947_s4, %s2898_s28 }
  0x2e   : > { %571 = vmatpush1.bf16.msra.mxu0 %v2995_v9  ;;  %928 = vmatpush1.bf16.msra.mxu1 %v2996_v10  ;;  %v3021_v35 = vld [vmem:[%s3945_s2 + $0xf0] sm:$0xff]   ;;  %v3024_v38 = vld [vmem:[%s3945_s2 + $0xe8] sm:$0xff]   ;;  %v3026_v41 = vld [vmem:[%s3945_s2 + $0xe0] sm:$0xff]  }
  0x2f   : > { %572 = vmatprep.subr.bf16.mxu0 %v3207_v5  ;;  %929 = vmatprep.subr.bf16.mxu1 %v3207_v5  ;;  %v3031_v37 = vld [vmem:[%s3945_s2 + $0x14c] sm:$0xff]   ;;  %v3032_v39 = vld [vmem:[%s3945_s2 + $0x144] sm:$0xff]   ;;  %v3447_v42 = vld [vmem:[%s3359_s30 + $0x34] ss:$8 sps:$4 sm:$0xff]  }
  0x30   : > { %v3440_v40 = vld [vmem:[%s3359_s30 + $0x20] ss:$8 sps:$4 sm:$0xff]   ;;  %v3030_v44 = vld [vmem:[%s3945_s2 + $0xd8] sm:$0xff]   ;;  %v3470_v47 = vld [vmem:[%s3359_s30 + $0x44] ss:$8 sps:$4 sm:$0xff]  }
  0x31   : > { %v3037_v43 = vld [vmem:[%s3945_s2 + $0x13c] sm:$0xff]   ;;  %v3039_v45 = vld [vmem:[%s3945_s2 + $0x134] sm:$0xff]   ;;  %v3044_v49 = vld [vmem:[%s3945_s2 + $0x12c] sm:$0xff]  }
  0x32   : > { %573 = vmatpush1.bf16.msra.mxu0 %v2997_v11  ;;  %930 = vmatpush1.bf16.msra.mxu1 %v2998_v12  ;;  %v3466_v46 = vld [vmem:[%s3359_s30 + $0x30] ss:$8 sps:$4 sm:$0xff]   ;;  %v3038_v50 = vld [vmem:[%s3945_s2 + $0xc8] sm:$0xff]   ;;  %v3498_v53 = vld [vmem:[%s3359_s30 + $0x54] ss:$8 sps:$4 sm:$0xff]  }
  0x33   : > { %574 = vmatprep.subr.bf16.mxu0 %v3207_v5  ;;  %931 = vmatprep.subr.bf16.mxu1 %v3207_v5  ;;  %v3035_v48 = vld [vmem:[%s3945_s2 + $0xd0] sm:$0xff]   ;;  %v3045_v51 = vld [vmem:[%s3945_s2 + $0x124] sm:$0xff]   ;;  %v3050_v55 = vld [vmem:[%s3945_s2 + $0x11c] sm:$0xff]  }
  0x34   : > { %v3495_v52 = vld [vmem:[%s3359_s30 + $0x40] ss:$8 sps:$4 sm:$0xff]   ;;  %v3048_v56 = vld [vmem:[%s3945_s2 + $0xb8] sm:$0xff]   ;;  %v3051_v57 = vld [vmem:[%s3945_s2 + $0x110] ss:$0 sps:$4 sm:$0x33]  }
  0x35   : > { %v3043_v54 = vld [vmem:[%s3945_s2 + $0xc0] sm:$0xff]   ;;  %v3052_v58 = vld [vmem:[%s3945_s2 + $0x114] sm:$0xff]   ;;  %v3057_v59 = vld [vmem:[%s3945_s2 + $0x16c] ss:$0 sps:$4 sm:$0x33]   ;;  %v1278_v62 = vsel %vm562_vm1, %v3051_v57, 0 }
  0x36   : > { %575 = vmatpush1.bf16.msra.mxu0 %v2999_v13  ;;  %932 = vmatpush1.bf16.msra.mxu1 %v3000_v14  ;;  %v3529_v60 = vld [vmem:[%s3359_s30 + $0x50] ss:$8 sps:$4 sm:$0xff]   ;;  %v3532_v61 = vld [vmem:[%s3359_s30 + $0x64] ss:$8 sps:$4 sm:$0xff]   ;;  %v1635_v63 = vsel %vm562_vm1, %v3057_v59, 0  ;;  %v3063_v6 = vld [vmem:[%s3945_s2 + $0x15c] sm:$0xff]  }
  0x37   : > { %576 = vmatprep.subr.bf16.mxu0 %v3207_v5  ;;  %933 = vmatprep.subr.bf16.mxu1 %v3207_v5  ;;  %v3056_v0 = vld [vmem:[%s3945_s2 + $0x108] sm:$0xff]   ;;  %v3556_v3 = vld [vmem:[%s3359_s30 + $0x74] ss:$8 sps:$4 sm:$0xff]   ;;  %v3061_v4 = vld [vmem:[%s3945_s2 + $0x100] sm:$0xff]  }
  0x38   : > { %v3058_v1 = vld [vmem:[%s3945_s2 + $0x164] sm:$0xff]   ;;  %v3064_v7 = vld [vmem:[%s3945_s2 + $0xf8] sm:$0xff]  }
  0x39   : > { %v3553_v2 = vld [vmem:[%s3359_s30 + $0x60] ss:$8 sps:$4 sm:$0xff]   ;;  %v3065_v8 = vld [vmem:[%s3945_s2 + $0x154] sm:$0xff]   ;;  %v3584_v10 = vld [vmem:[%s3359_s30 + $0x84] ss:$8 sps:$4 sm:$0xff]  }
  0x3a   : > { %577 = vmatpush1.bf16.msra.mxu0 %v3001_v15  ;;  %934 = vmatpush1.bf16.msra.mxu1 %v3002_v16  ;;  %v3581_v9 = vld [vmem:[%s3359_s30 + $0x70] ss:$8 sps:$4 sm:$0xff]   ;;  %v3595_v11 = vld [vmem:[%s3359_s30 + $0x80] ss:$8 sps:$4 sm:$0xff]  }
  0x3b   : > { %578 = vmatprep.subr.bf16.mxu0 %v3207_v5  ;;  %935 = vmatprep.subr.bf16.mxu1 %v3207_v5  ;;  %v3066_v12 = vld [vmem:[%s3945_s2 + $0x1a8] sm:$0xff]   ;;  %v3067_v13 = vld [vmem:[%s3945_s2 + $0x1a0] sm:$0xff]   ;;  %v3068_v14 = vld [vmem:[%s3945_s2 + $0x198] sm:$0xff]  }
  0x3c   : > { %v3069_v15 = vld [vmem:[%s3945_s2 + $0x190] sm:$0xff]   ;;  %v3070_v16 = vld [vmem:[%s3945_s2 + $0x188] sm:$0xff]   ;;  %v3081_v24 = vld [vmem:[%s3945_s2 + $0x1b8] sm:$0xff]  }
  0x3d   : > { %v3074_v20 = vld [vmem:[%s3945_s2 + $0x1c8] ss:$0 sps:$4 sm:$0x33]  }
  0x3e   : > { %579 = vmatpush1.bf16.msra.mxu0 %v3003_v17  ;;  %936 = vmatpush1.bf16.msra.mxu1 %v3004_v18  ;;  %v3071_v17 = vld [vmem:[%s3945_s2 + $0x180] sm:$0xff]   ;;  %v3072_v18 = vld [vmem:[%s3945_s2 + $0x178] sm:$0xff]   ;;  %v1992_v21 = vsel %vm562_vm1, %v3074_v20, 0 }
  0x3f   : > { %580 = vmatprep.subr.bf16.mxu0 %v3207_v5  ;;  %937 = vmatprep.subr.bf16.mxu1 %v3207_v5 }
  0x42   : > { %581 = vmatpush1.bf16.msra.mxu0 %v3005_v19  ;;  %938 = vmatpush1.bf16.msra.mxu1 %v3006_v23  ;;  %v3073_v19 = vld [vmem:[%s3945_s2 + $0x170] sm:$0xff]  }
  0x43   : > { %590 = vmatprep.subr.bf16.mxu0 %v3207_v5  ;;  %947 = vmatprep.subr.bf16.mxu1 %v3207_v5  ;;  %v3075_v23 = vld [vmem:[%s3359_s30 + $0x94] ss:$8 sps:$4 sm:$0xff]  }
  0x46   : > { %591 = vmatpush2.bf16.msra.mxu0 %v564_v25  ;;  %948 = vmatpush2.bf16.msra.mxu1 %v921_v26  ;;  %v3083_v25 = vld [vmem:[%s3945_s2 + $0x1b0] sm:$0xff]  }
  0x47   : > { %592 = vmatprep.subr.bf16.mxu0 %v3207_v5  ;;  %949 = vmatprep.subr.bf16.mxu1 %v3207_v5  ;;  %v3077_v26 = vld [vmem:[%s3359_s30 + $0x90] ss:$8 sps:$4 sm:$0xff]  }
  0x4a   : > { %593 = vmatpush2.bf16.msra.mxu0 %v3009_v27  ;;  %950 = vmatpush2.bf16.msra.mxu1 %v3010_v28  ;;  %v3079_v27 = vld [vmem:[%s3359_s30 + $0xa4] ss:$8 sps:$4 sm:$0xff]   ;;  %v3082_v28 = vld [vmem:[%s3359_s30 + $0xa0] ss:$8 sps:$4 sm:$0xff]  }
  0x4b   : > { %594 = vmatprep.subr.bf16.mxu0 %v3207_v5  ;;  %951 = vmatprep.subr.bf16.mxu1 %v3207_v5 }
  0x4e   : > { %595 = vmatpush2.bf16.msra.mxu0 %v3011_v29  ;;  %952 = vmatpush2.bf16.msra.mxu1 %v3012_v30  ;;  %v3086_v29 = vld [vmem:[%s3359_s30 + $0xb0] ss:$8 sps:$4 sm:$0xff]   ;;  %v3727_v30 = vld [vmem:[%s3946_s3] ss:$0 sm:$0xff] }
  0x4f   : > { %596 = vmatprep.subr.bf16.mxu0 %v3207_v5  ;;  %953 = vmatprep.subr.bf16.mxu1 %v3207_v5 }
  0x52   : > { %597 = vmatpush2.bf16.msra.mxu0 %v3013_v31  ;;  %954 = vmatpush2.bf16.msra.mxu1 %v3014_v32 }
  0x53   : > { %1280 = vmatprep.subr.bf16.mxu0 %v3207_v5  ;;  %1637 = vmatprep.subr.bf16.mxu1 %v3207_v5 }
  0x55   : > { %599 = vmatmul.mubr.bf16.vlgmr.msra.gmra.mxu0 %v3015_v33  ;;  %956 = vmatmul.mubr.bf16.vlgmr.msra.gmra.mxu1 %v3018_v34 }
  0x56   : > { %1281 = vmatpush1.bf16.msra.mxu0 %v3021_v35  ;;  %2568 = vmatprep.mubr.msk.bf16.mxu0 %vm537_vm0, %v3020_v22  ;;  %v3078_v22 = vld [vmem:[%s3945_s2 + $0x1c0] sm:$0xff]  }
  0x57   : > { %1282 = vmatprep.subr.bf16.mxu0 %v3207_v5  ;;  %2645 = vmatprep.mubr.msk.bf16.mxu1 %vm537_vm0, %v3422_v36 }
  0x58   : > { %1638 = vmatpush1.bf16.msra.mxu1 %v3031_v37 }
  0x59   : > { %1639 = vmatprep.subr.bf16.mxu1 %v3207_v5 }
  0x5a   : > { %1283 = vmatpush1.bf16.msra.mxu0 %v3024_v38 }
  0x5b   : > { %1284 = vmatprep.subr.bf16.mxu0 %v3207_v5 }
  0x5c   : > { %1640 = vmatpush1.bf16.msra.mxu1 %v3032_v39 }
  0x5d   : > { %607 = vmatmul.mubr.bf16.gmra.mxu0 %v3018_v34  ;;  %1641 = vmatprep.subr.bf16.mxu1 %v3207_v5 }
  0x5e   : > { %964 = vmatmul.mubr.bf16.gmra.mxu1 %v3440_v40  ;;  %1285 = vmatpush1.bf16.msra.mxu0 %v3026_v41 }
  0x5f   : > { %2569 = vmatprep.mubr.msk.bf16.mxu0 %vm537_vm0, %v3422_v36  ;;  %2646 = vmatprep.mubr.msk.bf16.mxu1 %vm537_vm0, %v3447_v42 }
  0x60   : > { %1286 = vmatprep.subr.bf16.mxu0 %v3207_v5  ;;  %1642 = vmatpush1.bf16.msra.mxu1 %v3037_v43 }
  0x61   : > { %1643 = vmatprep.subr.bf16.mxu1 %v3207_v5 }
  0x62   : > { %1287 = vmatpush1.bf16.msra.mxu0 %v3030_v44 }
  0x63   : > { %1288 = vmatprep.subr.bf16.mxu0 %v3207_v5 }
  0x64   : > { %1644 = vmatpush1.bf16.msra.mxu1 %v3039_v45 }
  0x65   : > { %615 = vmatmul.mubr.bf16.gmra.mxu0 %v3440_v40  ;;  %1645 = vmatprep.subr.bf16.mxu1 %v3207_v5 }
  0x66   : > { %972 = vmatmul.mubr.bf16.gmra.mxu1 %v3466_v46  ;;  %2570 = vmatprep.mubr.msk.bf16.mxu0 %vm537_vm0, %v3447_v42 }
  0x67   : > { %2647 = vmatprep.mubr.msk.bf16.mxu1 %vm537_vm0, %v3470_v47  ;;  %1289 = vmatpush1.bf16.msra.mxu0 %v3035_v48 }
  0x68   : > { %1290 = vmatprep.subr.bf16.mxu0 %v3207_v5  ;;  %1646 = vmatpush1.bf16.msra.mxu1 %v3044_v49 }
  0x69   : > { %1647 = vmatprep.subr.bf16.mxu1 %v3207_v5 }
  0x6b   : > { %1291 = vmatpush1.bf16.msra.mxu0 %v3038_v50 }
  0x6c   : > { %1292 = vmatprep.subr.bf16.mxu0 %v3207_v5  ;;  %1648 = vmatpush1.bf16.msra.mxu1 %v3045_v51 }
  0x6d   : > { %623 = vmatmul.mubr.bf16.gmra.mxu0 %v3466_v46  ;;  %1649 = vmatprep.subr.bf16.mxu1 %v3207_v5 }
  0x6e   : > { %980 = vmatmul.mubr.bf16.gmra.mxu1 %v3495_v52  ;;  %2571 = vmatprep.mubr.msk.bf16.mxu0 %vm537_vm0, %v3470_v47 }
  0x6f   : > { %2648 = vmatprep.mubr.msk.bf16.mxu1 %vm537_vm0, %v3498_v53  ;;  %1293 = vmatpush1.bf16.msra.mxu0 %v3043_v54 }
  0x70   : > { %1294 = vmatprep.subr.bf16.mxu0 %v3207_v5  ;;  %1650 = vmatpush1.bf16.msra.mxu1 %v3050_v55 }
  0x71   : > { %1651 = vmatprep.subr.bf16.mxu1 %v3207_v5 }
  0x73   : > { %1295 = vmatpush1.bf16.msra.mxu0 %v3048_v56 }
  0x74   : > { %1304 = vmatprep.subr.bf16.mxu0 %v3207_v5  ;;  %1652 = vmatpush1.bf16.msra.mxu1 %v3052_v58 }
  0x75   : > { %631 = vmatmul.mubr.bf16.gmra.mxu0 %v3495_v52  ;;  %1661 = vmatprep.subr.bf16.mxu1 %v3207_v5 }
  0x76   : > { %988 = vmatmul.mubr.bf16.gmra.mxu1 %v3529_v60  ;;  %2572 = vmatprep.mubr.msk.bf16.mxu0 %vm537_vm0, %v3498_v53 }
  0x77   : > { %2649 = vmatprep.mubr.msk.bf16.mxu1 %vm537_vm0, %v3532_v61  ;;  %1305 = vmatpush2.bf16.msra.mxu0 %v1278_v62 }
  0x78   : > { %1306 = vmatprep.subr.bf16.mxu0 %v3207_v5  ;;  %1662 = vmatpush2.bf16.msra.mxu1 %v1635_v63 }
  0x79   : > { %1663 = vmatprep.subr.bf16.mxu1 %v3207_v5 }
  0x7b   : > { %1307 = vmatpush2.bf16.msra.mxu0 %v3056_v0 }
  0x7c   : > { %1664 = vmatpush2.bf16.msra.mxu1 %v3058_v1  ;;  %1308 = vmatprep.subr.bf16.mxu0 %v3207_v5 }
  0x7d   : > { %639 = vmatmul.mubr.bf16.gmra.mxu0 %v3529_v60  ;;  %1665 = vmatprep.subr.bf16.mxu1 %v3207_v5 }
  0x7e   : > { %996 = vmatmul.mubr.bf16.gmra.mxu1 %v3553_v2  ;;  %2573 = vmatprep.mubr.msk.bf16.mxu0 %vm537_vm0, %v3532_v61 }
  0x7f   : > { %2650 = vmatprep.mubr.msk.bf16.mxu1 %vm537_vm0, %v3556_v3  ;;  %1309 = vmatpush2.bf16.msra.mxu0 %v3061_v4 }
  0x80   : > { %1666 = vmatpush2.bf16.msra.mxu1 %v3063_v6  ;;  %1310 = vmatprep.subr.bf16.mxu0 %v3207_v5 }
  0x81   : > { %1667 = vmatprep.subr.bf16.mxu1 %v3207_v5 }
  0x83   : > { %1311 = vmatpush2.bf16.msra.mxu0 %v3064_v7 }
  0x84   : > { %1668 = vmatpush2.bf16.msra.mxu1 %v3065_v8  ;;  %1994 = vmatprep.subr.bf16.mxu0 %v3207_v5 }
  0x85   : > { %647 = vmatmul.mubr.bf16.gmra.mxu0 %v3553_v2  ;;  %2909 = vmatprep.subr.bf16.mxu1 %v3207_v5 }
  0x86   : > { %1004 = vmatmul.mubr.bf16.gmra.mxu1 %v3581_v9  ;;  %2574 = vmatprep.mubr.msk.bf16.mxu0 %vm537_vm0, %v3556_v3 }
  0x87   : > { %2651 = vmatprep.mubr.msk.bf16.mxu1 %vm537_vm0, %v3584_v10 }
  0x8d   : > { %655 = vmatmul.mubr.bf16.gmra.mxu0 %v3581_v9 }
  0x8e   : > { %1012 = vmatmul.mubr.bf16.gmra.mxu1 %v3595_v11  ;;  %2721 = vmatprep.mubr.msk.bf16.mxu0 %vm537_vm0, %v3422_v36 }
  0x8f   : > { %2798 = vmatprep.mubr.msk.bf16.mxu1 %vm537_vm0, %v3447_v42 }
  0x95   : > { %1313 = vmatmul.mubr.bf16.vlgmr.msra.gmra.mxu0 %v3440_v40 }
  0x96   : > { %1670 = vmatmul.mubr.bf16.vlgmr.msra.gmra.mxu1 %v3466_v46  ;;  %1995 = vmatpush1.bf16.msra.mxu0 %v3066_v12 }
  0x97   : > { %1996 = vmatprep.subr.bf16.mxu0 %v3207_v5  ;;  %2722 = vmatprep.mubr.msk.bf16.mxu0 %vm537_vm0, %v3447_v42 }
  0x98   : > { %2799 = vmatprep.mubr.msk.bf16.mxu1 %vm537_vm0, %v3470_v47  ;;  %2921 = vmatpush1.bf16.msra.mxu1 %v3066_v12 }
  0x99   : > { %2910 = vmatprep.subr.bf16.mxu1 %v3207_v5 }
  0x9a   : > { %1997 = vmatpush1.bf16.msra.mxu0 %v3067_v13 }
  0x9b   : > { %1998 = vmatprep.subr.bf16.mxu0 %v3207_v5 }
  0x9c   : > { %2922 = vmatpush1.bf16.msra.mxu1 %v3067_v13 }
  0x9d   : > { %1321 = vmatmul.mubr.bf16.gmra.mxu0 %v3466_v46  ;;  %2911 = vmatprep.subr.bf16.mxu1 %v3207_v5 }
  0x9e   : > { %1678 = vmatmul.mubr.bf16.gmra.mxu1 %v3495_v52  ;;  %1999 = vmatpush1.bf16.msra.mxu0 %v3068_v14 }
  0x9f   : > { %2723 = vmatprep.mubr.msk.bf16.mxu0 %vm537_vm0, %v3470_v47  ;;  %2800 = vmatprep.mubr.msk.bf16.mxu1 %vm537_vm0, %v3498_v53 }
  0xa0   : > { %2000 = vmatprep.subr.bf16.mxu0 %v3207_v5  ;;  %2923 = vmatpush1.bf16.msra.mxu1 %v3068_v14 }
  0xa1   : > { %2912 = vmatprep.subr.bf16.mxu1 %v3207_v5 }
  0xa2   : > { %2001 = vmatpush1.bf16.msra.mxu0 %v3069_v15 }
  0xa3   : > { %2002 = vmatprep.subr.bf16.mxu0 %v3207_v5 }
  0xa4   : > { %2924 = vmatpush1.bf16.msra.mxu1 %v3069_v15 }
  0xa5   : > { %1329 = vmatmul.mubr.bf16.gmra.mxu0 %v3495_v52  ;;  %2913 = vmatprep.subr.bf16.mxu1 %v3207_v5 }
  0xa6   : > { %1686 = vmatmul.mubr.bf16.gmra.mxu1 %v3529_v60  ;;  %2724 = vmatprep.mubr.msk.bf16.mxu0 %vm537_vm0, %v3498_v53 }
  0xa7   : > { %2801 = vmatprep.mubr.msk.bf16.mxu1 %vm537_vm0, %v3532_v61  ;;  %2003 = vmatpush1.bf16.msra.mxu0 %v3070_v16 }
  0xa8   : > { %2004 = vmatprep.subr.bf16.mxu0 %v3207_v5  ;;  %2925 = vmatpush1.bf16.msra.mxu1 %v3070_v16 }
  0xa9   : > { %2914 = vmatprep.subr.bf16.mxu1 %v3207_v5 }
  0xab   : > { %2005 = vmatpush1.bf16.msra.mxu0 %v3071_v17 }
  0xac   : > { %2006 = vmatprep.subr.bf16.mxu0 %v3207_v5  ;;  %2926 = vmatpush1.bf16.msra.mxu1 %v3071_v17 }
  0xad   : > { %1337 = vmatmul.mubr.bf16.gmra.mxu0 %v3529_v60  ;;  %2915 = vmatprep.subr.bf16.mxu1 %v3207_v5 }
  0xae   : > { %1694 = vmatmul.mubr.bf16.gmra.mxu1 %v3553_v2  ;;  %2725 = vmatprep.mubr.msk.bf16.mxu0 %vm537_vm0, %v3532_v61 }
  0xaf   : > { %2802 = vmatprep.mubr.msk.bf16.mxu1 %vm537_vm0, %v3556_v3  ;;  %2007 = vmatpush1.bf16.msra.mxu0 %v3072_v18 }
  0xb0   : > { %2008 = vmatprep.subr.bf16.mxu0 %v3207_v5  ;;  %2927 = vmatpush1.bf16.msra.mxu1 %v3072_v18 }
  0xb1   : > { %2916 = vmatprep.subr.bf16.mxu1 %v3207_v5 }
  0xb3   : > { %2009 = vmatpush1.bf16.msra.mxu0 %v3073_v19 }
  0xb4   : > { %2018 = vmatprep.subr.bf16.mxu0 %v3207_v5  ;;  %2928 = vmatpush1.bf16.msra.mxu1 %v3073_v19 }
  0xb5   : > { %1345 = vmatmul.mubr.bf16.gmra.mxu0 %v3553_v2  ;;  %2917 = vmatprep.subr.bf16.mxu1 %v3207_v5 }
  0xb6   : > { %1702 = vmatmul.mubr.bf16.gmra.mxu1 %v3581_v9  ;;  %2726 = vmatprep.mubr.msk.bf16.mxu0 %vm537_vm0, %v3556_v3 }
  0xb7   : > { %2803 = vmatprep.mubr.msk.bf16.mxu1 %vm537_vm0, %v3584_v10  ;;  %2019 = vmatpush2.bf16.msra.mxu0 %v1992_v21 }
  0xb8   : > { %2020 = vmatprep.subr.bf16.mxu0 %v3207_v5  ;;  %2929 = vmatpush2.bf16.msra.mxu1 %v1992_v21 }
  0xb9   : > { %2918 = vmatprep.subr.bf16.mxu1 %v3207_v5 }
  0xbb   : > { %2021 = vmatpush2.bf16.msra.mxu0 %v3078_v22 }
  0xbc   : > { %2930 = vmatpush2.bf16.msra.mxu1 %v3078_v22  ;;  %2022 = vmatprep.subr.bf16.mxu0 %v3207_v5 }
  0xbd   : > { %1353 = vmatmul.mubr.bf16.gmra.mxu0 %v3581_v9  ;;  %2919 = vmatprep.subr.bf16.mxu1 %v3207_v5 }
  0xbe   : > { %1710 = vmatmul.mubr.bf16.gmra.mxu1 %v3595_v11  ;;  %2727 = vmatprep.mubr.msk.bf16.mxu0 %vm537_vm0, %v3584_v10 }
  0xbf   : > { %2804 = vmatprep.mubr.msk.bf16.mxu1 %vm537_vm0, %v3075_v23  ;;  %2023 = vmatpush2.bf16.msra.mxu0 %v3081_v24 }
  0xc0   : > { %2931 = vmatpush2.bf16.msra.mxu1 %v3081_v24  ;;  %2024 = vmatprep.subr.bf16.mxu0 %v3207_v5 }
  0xc1   : > { %2920 = vmatprep.subr.bf16.mxu1 %v3207_v5  ;;  %v3084_v5 = vld [vmem:[%s3359_s30 + $0xb4] ss:$8 sps:$4 sm:$0xff]   ;;  %s273_s30 = sand.u32 1, %s3181_s18  }
  0xc2   : > { %s3887_s14 = sshll.u32 %s273_s30, 5 }
  0xc3   : > { %2025 = vmatpush2.bf16.msra.mxu0 %v3083_v25  ;;  %s3890_s18 = scalar_lea.vmem [#allocation3], %s3887_s14  ;;  %s3895_s15 = scalar_lea.vmem [#allocation5], %s3887_s14 }
  0xc4   : > { %2932 = vmatpush2.bf16.msra.mxu1 %v3083_v25  ;;  %s301_s16 = scalar_lea.vmem [#allocation4], %s3887_s14 }
  0xc5   : > { %1361 = vmatmul.mubr.bf16.gmra.mxu0 %v3595_v11 }
  0xc6   : > { %1718 = vmatmul.mubr.bf16.gmra.mxu1 %v3077_v26  ;;  %2728 = vmatprep.mubr.msk.bf16.mxu0 %vm537_vm0, %v3075_v23 }
  0xc7   : > { %2805 = vmatprep.mubr.msk.bf16.mxu1 %vm537_vm0, %v3079_v27 }
  0xcd   : > { %1369 = vmatmul.mubr.bf16.gmra.mxu0 %v3077_v26 }
  0xce   : > { %1726 = vmatmul.mubr.bf16.gmra.mxu1 %v3082_v28  ;;  %2875 = vmatprep.mubr.msk.bf16.mxu0 %vm537_vm0, %v3470_v47 }
  0xcf   : > { %2879 = vmatprep.mubr.msk.bf16.mxu1 %vm537_vm0, %v3584_v10 }
  0xd5   : > { %2027 = vmatmul.mubr.bf16.vlgmr.msra.gmra.mxu0 %v3495_v52 }
  0xd6   : > { %2059 = vmatmul.mubr.bf16.vlgmr.msra.gmra.mxu1 %v3595_v11  ;;  %2876 = vmatprep.mubr.msk.bf16.mxu0 %vm537_vm0, %v3498_v53 }
  0xd7   : > { %2880 = vmatprep.mubr.msk.bf16.mxu1 %vm537_vm0, %v3075_v23 }
  0xdd   : > { %2035 = vmatmul.mubr.bf16.gmra.mxu0 %v3529_v60 }
  0xde   : > { %2067 = vmatmul.mubr.bf16.gmra.mxu1 %v3077_v26  ;;  %2877 = vmatprep.mubr.msk.bf16.mxu0 %vm537_vm0, %v3532_v61 }
  0xdf   : > { %2881 = vmatprep.mubr.msk.bf16.mxu1 %vm537_vm0, %v3079_v27 }
  0xe5   : > { %2043 = vmatmul.mubr.bf16.gmra.mxu0 %v3553_v2 }
  0xe6   : > { %2075 = vmatmul.mubr.bf16.gmra.mxu1 %v3082_v28  ;;  %2878 = vmatprep.mubr.msk.bf16.mxu0 %vm537_vm0, %v3556_v3 }
  0xe7   : > { %2882 = vmatprep.mubr.msk.bf16.mxu1 %vm537_vm0, %v3084_v5 }
  0xed   : > { %2051 = vmatmul.mubr.bf16.gmra.mxu0 %v3581_v9 }
  0xee   : > { %2083 = vmatmul.mubr.bf16.gmra.mxu1 %v3086_v29 }
 0x115   : > { %v600_v31 = vpop.f32.mrf.mxu0  ;;  %v957_v33 = vpop.f32.mrf.mxu1 }
 0x116   : > { %v663_v32 = vadd.f32 %v3727_v30, %v600_v31 }
 0x117   : > { %v602_v34 = vpop.f32.mrf.mxu0  ;;  %v959_v36 = vpop.f32.mrf.mxu1 }
 0x118   : > { %v3730_v35 = vadd.f32 %v957_v33, %v663_v32 }
 0x119   : > { %v603_v37 = vpop.f32.mrf.mxu0  ;;  %v960_v39 = vpop.f32.mrf.mxu1 }
 0x11a   : > { %v664_v38 = vadd.f32 %v3727_v30, %v603_v37 }
 0x11b   : > { %v605_v40 = vpop.f32.mrf.mxu0  ;;  %v962_v42 = vpop.f32.mrf.mxu1 }
 0x11c   : > { %v3733_v41 = vadd.f32 %v960_v39, %v664_v38 }
 0x11d   : > { %v608_v43 = vpop.f32.mrf.mxu0 }
 0x11e   : > { %v665_v44 = vadd.f32 %v3727_v30, %v608_v43  ;;  %v965_v45 = vpop.f32.mrf.mxu1 }
 0x11f   : > { %v610_v46 = vpop.f32.mrf.mxu0 }
 0x120   : > { %v3736_v47 = vadd.f32 %v965_v45, %v665_v44  ;;  %v967_v48 = vpop.f32.mrf.mxu1 }
 0x121   : > { %v611_v49 = vpop.f32.mrf.mxu0 }
 0x122   : > { %v666_v50 = vadd.f32 %v3727_v30, %v611_v49  ;;  %v968_v51 = vpop.f32.mrf.mxu1 }
 0x123   : > { %v613_v52 = vpop.f32.mrf.mxu0 }
 0x124   : > { %v3739_v53 = vadd.f32 %v968_v51, %v666_v50  ;;  %v970_v54 = vpop.f32.mrf.mxu1 }
 0x125   : > { %v616_v55 = vpop.f32.mrf.mxu0 }
 0x126   : > { %v667_v56 = vadd.f32 %v3727_v30, %v616_v55  ;;  %v973_v57 = vpop.f32.mrf.mxu1 }
 0x127   : > { %v618_v58 = vpop.f32.mrf.mxu0 }
 0x128   : > { %v3742_v59 = vadd.f32 %v973_v57, %v667_v56  ;;  %v975_v60 = vpop.f32.mrf.mxu1 }
 0x129   : > { %v619_v61 = vpop.f32.mrf.mxu0 }
 0x12a   : > { %v668_v62 = vadd.f32 %v3727_v30, %v619_v61  ;;  %v976_v63 = vpop.f32.mrf.mxu1 }
 0x12b   : > { %v621_v0 = vpop.f32.mrf.mxu0 }
 0x12c   : > { %v3745_v1 = vadd.f32 %v976_v63, %v668_v62  ;;  %v978_v2 = vpop.f32.mrf.mxu1 }
 0x12d   : > { %v624_v3 = vpop.f32.mrf.mxu0 }
 0x12e   : > { %v669_v4 = vadd.f32 %v3727_v30, %v624_v3  ;;  %v981_v6 = vpop.f32.mrf.mxu1 }
 0x12f   : > { %v626_v7 = vpop.f32.mrf.mxu0 }
 0x130   : > { %v3748_v8 = vadd.f32 %v981_v6, %v669_v4  ;;  %v983_v9 = vpop.f32.mrf.mxu1 }
 0x131   : > { %v627_v10 = vpop.f32.mrf.mxu0 }
 0x132   : > { %v670_v11 = vadd.f32 %v3727_v30, %v627_v10  ;;  %v984_v12 = vpop.f32.mrf.mxu1 }
 0x133   : > { %v629_v13 = vpop.f32.mrf.mxu0 }
 0x134   : > { %v3751_v14 = vadd.f32 %v984_v12, %v670_v11  ;;  %v986_v15 = vpop.f32.mrf.mxu1 }
 0x135   : > { %v632_v16 = vpop.f32.mrf.mxu0 }
 0x136   : > { %v671_v17 = vadd.f32 %v3727_v30, %v632_v16  ;;  %v989_v18 = vpop.f32.mrf.mxu1 }
 0x137   : > { %v634_v19 = vpop.f32.mrf.mxu0 }
 0x138   : > { %v3754_v20 = vadd.f32 %v989_v18, %v671_v17  ;;  %v991_v21 = vpop.f32.mrf.mxu1 }
 0x139   : > { %v635_v22 = vpop.f32.mrf.mxu0 }
 0x13a   : > { %v672_v23 = vadd.f32 %v3727_v30, %v635_v22  ;;  %v992_v24 = vpop.f32.mrf.mxu1 }
 0x13b   : > { %v637_v25 = vpop.f32.mrf.mxu0 }
 0x13c   : > { %v3757_v26 = vadd.f32 %v992_v24, %v672_v23  ;;  %v994_v27 = vpop.f32.mrf.mxu1 }
 0x13d   : > { %v640_v28 = vpop.f32.mrf.mxu0 }
 0x13e   : > { %v673_v5 = vadd.f32 %v3727_v30, %v640_v28  ;;  %v997_v29 = vpop.f32.mrf.mxu1 }
 0x13f   : > { %v642_v31 = vpop.f32.mrf.mxu0 }
 0x140   : > { %v3760_v32 = vadd.f32 %v997_v29, %v673_v5  ;;  %v999_v33 = vpop.f32.mrf.mxu1 }
 0x141   : > { %v643_v34 = vpop.f32.mrf.mxu0 }
 0x142   : > { %v674_v36 = vadd.f32 %v3727_v30, %v643_v34  ;;  %v1000_v37 = vpop.f32.mrf.mxu1 }
 0x143   : > { %v645_v38 = vpop.f32.mrf.mxu0 }
 0x144   : > { %v3763_v39 = vadd.f32 %v1000_v37, %v674_v36  ;;  %v1002_v40 = vpop.f32.mrf.mxu1 }
 0x145   : > { %v648_v42 = vpop.f32.mrf.mxu0 }
 0x146   : > { %v675_v43 = vadd.f32 %v3727_v30, %v648_v42  ;;  %v1005_v44 = vpop.f32.mrf.mxu1 }
 0x147   : > { %v650_v45 = vpop.f32.mrf.mxu0 }
 0x148   : > { %v3766_v46 = vadd.f32 %v1005_v44, %v675_v43  ;;  %v1007_v48 = vpop.f32.mrf.mxu1 }
 0x149   : > { %v651_v49 = vpop.f32.mrf.mxu0 }
 0x14a   : > { %v676_v50 = vadd.f32 %v3727_v30, %v651_v49  ;;  %v1008_v51 = vpop.f32.mrf.mxu1 }
 0x14b   : > { %v653_v52 = vpop.f32.mrf.mxu0 }
 0x14c   : > { %v3769_v54 = vadd.f32 %v1008_v51, %v676_v50  ;;  %v1010_v55 = vpop.f32.mrf.mxu1 }
 0x14d   : > { %v656_v56 = vpop.f32.mrf.mxu0 }
 0x14e   : > { %v677_v57 = vadd.f32 %v3727_v30, %v656_v56  ;;  %v1013_v58 = vpop.f32.mrf.mxu1 }
 0x14f   : > { %v658_v60 = vpop.f32.mrf.mxu0 }
 0x150   : > { %v3772_v61 = vadd.f32 %v1013_v58, %v677_v57  ;;  %v1015_v62 = vpop.f32.mrf.mxu1 }
 0x151   : > { %v659_v63 = vpop.f32.mrf.mxu0 }
 0x152   : > { %v678_v0 = vadd.f32 %v3727_v30, %v659_v63  ;;  %v1016_v2 = vpop.f32.mrf.mxu1 }
 0x153   : > { %v661_v3 = vpop.f32.mrf.mxu0 }
 0x154   : > { %v3775_v4 = vadd.f32 %v1016_v2, %v678_v0  ;;  %v1018_v6 = vpop.f32.mrf.mxu1 }
 0x155   : > { %v1314_v7 = vpop.f32.mrf.mxu0 }
 0x156   : > { %v3777_v9 = vpop.f32.mrf.mxu1 }
 0x157   : > { %v1316_v10 = vpop.f32.mrf.mxu0 }
 0x158   : > { %v1673_v11 = vpop.f32.mrf.mxu1 }
 0x159   : > { %v1317_v12 = vpop.f32.mrf.mxu0 }
 0x15a   : > { %v3779_v13 = vpop.f32.mrf.mxu1 }
 0x15b   : > { %v1319_v15 = vpop.f32.mrf.mxu0 }
 0x15c   : > { %v1676_v16 = vpop.f32.mrf.mxu1 }
 0x15d   : > { %v3781_v17 = vpop.f32.mrf.mxu0 }
 0x15e   : > { %v3783_v18 = vpop.f32.mrf.mxu1 }
 0x15f   : > { %v1324_v30 = vpop.f32.mrf.mxu0 }
 0x160   : > { %v1681_v19 = vpop.f32.mrf.mxu1 }
 0x161   : > { %v3785_v21 = vpop.f32.mrf.mxu0 }
 0x162   : > { %v3787_v22 = vpop.f32.mrf.mxu1 }
 0x163   : > { %v1327_v23 = vpop.f32.mrf.mxu0 }
 0x164   : > { %v1684_v24 = vpop.f32.mrf.mxu1 }
 0x165   : > { %v3789_v25 = vpop.f32.mrf.mxu0 }
 0x166   : > { %v3791_v27 = vpop.f32.mrf.mxu1 }
 0x167   : > { %v1332_v28 = vpop.f32.mrf.mxu0 }
 0x168   : > { %v1689_v5 = vpop.f32.mrf.mxu1 }
 0x169   : > { %v3793_v29 = vpop.f32.mrf.mxu0 }
 0x16a   : > { %v3795_v31 = vpop.f32.mrf.mxu1 }
 0x16b   : > { %v1335_v33 = vpop.f32.mrf.mxu0 }
 0x16c   : > { %v1692_v34 = vpop.f32.mrf.mxu1 }
 0x16d   : > { %v3797_v36 = vpop.f32.mrf.mxu0  ;;  %v1377_v34 = vadd.f32 %v1314_v7, %v3730_v35  ;;  %v1379_v35 = vadd.f32 %v3781_v17, %v3736_v47  ;;  %v1381_v47 = vadd.f32 %v3789_v25, %v3742_v59 }
 0x16e   : > { %v3799_v37 = vpop.f32.mrf.mxu1  ;;  %v1383_v59 = vadd.f32 %v3797_v36, %v3748_v8 }
 0x16f   : > { %v1340_v38 = vpop.f32.mrf.mxu0 }
 0x170   : > { %v1697_v40 = vpop.f32.mrf.mxu1 }
 0x171   : > { %v3801_v42 = vpop.f32.mrf.mxu0 }
 0x172   : > { %v3803_v43 = vpop.f32.mrf.mxu1 }
 0x173   : > { %v1343_v44 = vpop.f32.mrf.mxu0 }
 0x174   : > { %v1700_v45 = vpop.f32.mrf.mxu1 }
 0x175   : > { %v3805_v48 = vpop.f32.mrf.mxu0 }
 0x176   : > { %v3807_v49 = vpop.f32.mrf.mxu1  ;;  %v1385_v8 = vadd.f32 %v3805_v48, %v3754_v20 }
 0x177   : > { %v1348_v50 = vpop.f32.mrf.mxu0 }
 0x178   : > { %v1705_v51 = vpop.f32.mrf.mxu1  ;;  %v1734_v50 = vadd.f32 %v3777_v9, %v1377_v34  ;;  %v1736_v9 = vadd.f32 %v3783_v18, %v1379_v35 }
 0x179   : > { %v3809_v52 = vpop.f32.mrf.mxu0  ;;  %v1378_v51 = vadd.f32 %v1317_v12, %v3733_v41  ;;  %v1380_v41 = vadd.f32 %v3785_v21, %v3739_v53  ;;  %v1382_v53 = vadd.f32 %v3793_v29, %v3745_v1  ;;  %v1384_v1 = vadd.f32 %v3801_v42, %v3751_v14 }
 0x17a   : > { %v3811_v55 = vpop.f32.mrf.mxu1  ;;  %v1386_v14 = vadd.f32 %v3809_v52, %v3757_v26 }
 0x17b   : > { %v1351_v56 = vpop.f32.mrf.mxu0  ;;  %v1739_v35 = vadd.f32 %v3795_v31, %v1382_v53 }
 0x17c   : > { %v1708_v57 = vpop.f32.mrf.mxu1 }
 0x17d   : > { %v3813_v58 = vpop.f32.mrf.mxu0 }
 0x17e   : > { %v3815_v60 = vpop.f32.mrf.mxu1  ;;  %v1387_v20 = vadd.f32 %v3813_v58, %v3760_v32 }
 0x17f   : > { %v1356_v62 = vpop.f32.mrf.mxu0 }
 0x180   : > { %v1713_v63 = vpop.f32.mrf.mxu1 }
 0x181   : > { %v3817_v0 = vpop.f32.mrf.mxu0 }
 0x182   : > { %v3819_v2 = vpop.f32.mrf.mxu1 }
 0x183   : > { %v1359_v3 = vpop.f32.mrf.mxu0 }
 0x184   : > { %v1716_v6 = vpop.f32.mrf.mxu1 }
 0x185   : > { %v3821_v10 = vpop.f32.mrf.mxu0  ;;  %v1735_v6 = vadd.f32 %v3779_v13, %v1378_v51 }
 0x186   : > { %v3823_v11 = vpop.f32.mrf.mxu1  ;;  %v1389_v52 = vadd.f32 %v3821_v10, %v3766_v46 }
 0x187   : > { %v1364_v15 = vpop.f32.mrf.mxu0 }
 0x188   : > { %v1721_v16 = vpop.f32.mrf.mxu1 }
 0x189   : > { %v3825_v30 = vpop.f32.mrf.mxu0 }
 0x18a   : > { %v3827_v19 = vpop.f32.mrf.mxu1  ;;  %v1390_v32 = vadd.f32 %v3825_v30, %v3769_v54 }
 0x18b   : > { %v1367_v23 = vpop.f32.mrf.mxu0 }
 0x18c   : > { %v1724_v24 = vpop.f32.mrf.mxu1 }
 0x18d   : > { %v3829_v28 = vpop.f32.mrf.mxu0 }
 0x18e   : > { %v3831_v5 = vpop.f32.mrf.mxu1 }
 0x18f   : > { %v1372_v33 = vpop.f32.mrf.mxu0 }
 0x190   : > { %v1729_v38 = vpop.f32.mrf.mxu1 }
 0x191   : > { %v3834_v40 = vpop.f32.mrf.mxu0 }
 0x192   : > { %v3836_v44 = vpop.f32.mrf.mxu1  ;;  %v1392_v46 = vadd.f32 %v3834_v40, %v3775_v4 }
 0x193   : > { %v1375_v45 = vpop.f32.mrf.mxu0 }
 0x194   : > { %v1732_v56 = vpop.f32.mrf.mxu1  ;;  %v1737_v45 = vadd.f32 %v3787_v22, %v1380_v41 }
 0x195   : > { %v2028_v57 = vpop.f32.mrf.mxu0 }
 0x196   : > { %v3840_v62 = vpop.f32.mrf.mxu1  ;;  %v2091_v63 = vadd.f32 %v2028_v57, %v1734_v50  ;;  %v1738_v57 = vadd.f32 %v3791_v27, %v1381_v47  ;;  %v1742_v47 = vadd.f32 %v3807_v49, %v1385_v8 }
 0x197   : > { %v2030_v3 = vpop.f32.mrf.mxu0 }
 0x198   : > { %v2062_v7 = vpop.f32.mrf.mxu1  ;;  %2139 = vxpose.xlu0.b32.start [1/16] %v2091_v63, 128 }
 0x199   : > { %v2031_v15 = vpop.f32.mrf.mxu0 }
 0x19a   : > { %v2092_v16 = vadd.f32 %v2031_v15, %v1735_v6  ;;  %v2063_v23 = vpop.f32.mrf.mxu1 }
 0x19b   : > { %v2033_v24 = vpop.f32.mrf.mxu0 }
 0x19c   : > { %v2065_v12 = vpop.f32.mrf.mxu1  ;;  %2140 = vxpose.xlu0.b32.cont [2/16] %v2092_v16, 128  ;;  %v1740_v24 = vadd.f32 %v3799_v37, %v1383_v59 }
 0x19d   : > { %v2036_v33 = vpop.f32.mrf.mxu0 }
 0x19e   : > { %v2093_v34 = vadd.f32 %v2036_v33, %v1736_v9  ;;  %v2068_v38 = vpop.f32.mrf.mxu1  ;;  %v1741_v33 = vadd.f32 %v3803_v43, %v1384_v1  ;;  %v1743_v43 = vadd.f32 %v3811_v55, %v1386_v14  ;;  %v1746_v55 = vadd.f32 %v3823_v11, %v1389_v52 }
 0x19f   : > { %v2038_v13 = vpop.f32.mrf.mxu0  ;;  %v1749_v11 = vadd.f32 %v3836_v44, %v1392_v46 }
 0x1a0   : > { %v2070_v17 = vpop.f32.mrf.mxu1  ;;  %2141 = vxpose.xlu0.b32.cont [3/16] %v2093_v34, 128  ;;  %v2100_v48 = vadd.f32 %v2063_v23, %v1743_v43 }
 0x1a1   : > { %v2039_v50 = vpop.f32.mrf.mxu0  ;;  %v2099_v17 = vadd.f32 %v3840_v62, %v1742_v47 }
 0x1a2   : > { %v2094_v51 = vadd.f32 %v2039_v50, %v1737_v45  ;;  %v2071_v56 = vpop.f32.mrf.mxu1  ;;  %v1744_v50 = vadd.f32 %v3815_v60, %v1387_v20  ;;  %v1747_v60 = vadd.f32 %v3827_v19, %v1390_v32  ;;  %v2247_v20 = vld [vmem:[%s3890_s18] sm:$0xff]  ;;  %v2248_v32 = vld [vmem:[%s3890_s18 + $0x8] sm:$0xff] }
 0x1a3   : > { %v2041_v18 = vpop.f32.mrf.mxu0 }
 0x1a4   : > { %v2073_v21 = vpop.f32.mrf.mxu1  ;;  %2142 = vxpose.xlu0.b32.cont [4/16] %v2094_v51, 128  ;;  %v1388_v51 = vadd.f32 %v3817_v0, %v3763_v39  ;;  %v2101_v49 = vadd.f32 %v2068_v38, %v1744_v50  ;;  %v1391_v39 = vadd.f32 %v3829_v28, %v3772_v61 }
 0x1a5   : > { %v2044_v63 = vpop.f32.mrf.mxu0 }
 0x1a6   : > { %v2095_v3 = vadd.f32 %v2044_v63, %v1738_v57  ;;  %v2076_v6 = vpop.f32.mrf.mxu1  ;;  %v1745_v26 = vadd.f32 %v3819_v2, %v1388_v51  ;;  %v1748_v2 = vadd.f32 %v3831_v5, %v1391_v39 }
 0x1a7   : > { %v2046_v22 = vpop.f32.mrf.mxu0  ;;  %v2103_v58 = vadd.f32 %v2076_v6, %v1746_v55 }
 0x1a8   : > { %v2078_v25 = vpop.f32.mrf.mxu1  ;;  %2143 = vxpose.xlu0.b32.cont [5/16] %v2095_v3, 128  ;;  %v2102_v62 = vadd.f32 %v2071_v56, %v1745_v26 }
 0x1a9   : > { %v2047_v7 = vpop.f32.mrf.mxu0 }
 0x1aa   : > { %v2096_v15 = vadd.f32 %v2047_v7, %v1739_v35  ;;  %v2079_v16 = vpop.f32.mrf.mxu1 }
 0x1ab   : > { %v2049_v27 = vpop.f32.mrf.mxu0  ;;  %v2104_v0 = vadd.f32 %v2079_v16, %v1747_v60 }
 0x1ac   : > { %v2081_v29 = vpop.f32.mrf.mxu1  ;;  %2144 = vxpose.xlu0.b32.cont [6/16] %v2096_v15, 128 }
 0x1ad   : > { %v2052_v9 = vpop.f32.mrf.mxu0 }
 0x1ae   : > { %v2097_v41 = vadd.f32 %v2052_v9, %v1740_v24  ;;  %v2084_v12 = vpop.f32.mrf.mxu1 }
 0x1af   : > { %v2054_v31 = vpop.f32.mrf.mxu0  ;;  %v2105_v10 = vadd.f32 %v2084_v12, %v1748_v2 }
 0x1b0   : > { %v2086_v36 = vpop.f32.mrf.mxu1  ;;  %2145 = vxpose.xlu0.b32.cont [7/16] %v2097_v41, 128 }
 0x1b1   : > { %v2055_v34 = vpop.f32.mrf.mxu0 }
 0x1b2   : > { %v2098_v13 = vadd.f32 %v2055_v34, %v1741_v33  ;;  %v2087_v45 = vpop.f32.mrf.mxu1 }
 0x1b3   : > { %v2057_v37 = vpop.f32.mrf.mxu0  ;;  %v2106_v54 = vadd.f32 %v2087_v45, %v1749_v11 }
 0x1b4   : > { %2146 = vxpose.xlu0.b32.cont [8/16] %v2098_v13, 128  ;;  %v2089_v42 = vpop.f32.mrf.mxu1 }
 0x1b8   : > { %2147 = vxpose.xlu0.b32.cont [9/16] %v2099_v17, 128 }
 0x1bc   : > { %2148 = vxpose.xlu0.b32.cont [10/16] %v2100_v48, 128 }
 0x1c0   : > { %2149 = vxpose.xlu0.b32.cont [11/16] %v2101_v49, 128 }
 0x1c4   : > { %2150 = vxpose.xlu0.b32.cont [12/16] %v2102_v62, 128 }
 0x1c8   : > { %2151 = vxpose.xlu0.b32.cont [13/16] %v2103_v58, 128 }
 0x1cc   : > { %2152 = vxpose.xlu0.b32.cont [14/16] %v2104_v0, 128 }
 0x1d0   : > { %2153 = vxpose.xlu0.b32.cont [15/16] %v2105_v10, 128 }
 0x1d4   : > { %2154 = vxpose.xlu0.b32.end [16/16] %v2106_v54, 128  ;;  %v2249_v54 = vld [vmem:[%s3890_s18 + $0x10] sm:$0xff] }
 0x214   : > { %v2155_v30 = vpop.trf.xlu0 }
 0x215   : > { %v2883_v18 = vmul.f32 -1.442695, %v2155_v30 }
 0x218   : > { %v2156_v23 = vpop.trf.xlu0 }
 0x219   : > { %v2884_v4 = vmul.f32 -1.442695, %v2156_v23 }
 0x21c   : > { %v2157_v19 = vpop.trf.xlu0 }
 0x21d   : > { %v2885_v44 = vmul.f32 -1.442695, %v2157_v19 }
 0x220   : > { %v2158_v38 = vpop.trf.xlu0 }
 0x221   : > { %v2886_v3 = vmul.f32 -1.442695, %v2158_v38 }
 0x224   : > { %v2159_v56 = vpop.trf.xlu0 }
 0x225   : > { %v2887_v28 = vmul.f32 -1.442695, %v2159_v56 }
 0x227   : > { %3087 = vpow2.f32 %v2887_v28 }
 0x228   : > { %v2160_v61 = vpop.trf.xlu0  ;;  %3089 = vpow2.f32 %v2883_v18 }
 0x229   : > { %v2888_v5 = vmul.f32 -1.442695, %v2160_v61 }
 0x22b   : > { %3091 = vpow2.f32 %v2888_v5 }
 0x22c   : > { %v2161_v57 = vpop.trf.xlu0  ;;  %3093 = vpow2.f32 %v2884_v4 }
 0x22d   : > { %v2889_v53 = vmul.f32 -1.442695, %v2161_v57  ;;  %v2250_v57 = vld [vmem:[%s3890_s18 + $0x18] sm:$0xff] }
 0x22f   : > { %3095 = vpow2.f32 %v2889_v53 }
 0x230   : > { %v2162_v40 = vpop.trf.xlu0  ;;  %3097 = vpow2.f32 %v2885_v44 }
 0x231   : > { %v2890_v63 = vmul.f32 -1.442695, %v2162_v40 }
 0x233   : > { %3099 = vpow2.f32 %v2890_v63 }
 0x234   : > { %v2163_v21 = vpop.trf.xlu0  ;;  %v3088_v22 = vpop.eup %3087  ;;  %3101 = vpow2.f32 %v2886_v3 }
 0x235   : > { %v3090_v59 = vpop.eup %3089  ;;  %v2891_v25 = vmul.f32 -1.442695, %v2163_v21  ;;  %v2207_v7 = vadd.f32 1.0, %v3088_v22 }
 0x236   : > { %v2183_v16 = vadd.f32 1.0, %v3090_v59 }
 0x237   : > { %3103 = vpow2.f32 %v2891_v25 }
 0x238   : > { %v2164_v6 = vpop.trf.xlu0  ;;  %v3092_v15 = vpop.eup %3091  ;;  %3105 = vrcp.f32 %v2207_v7 }
 0x239   : > { %v3094_v24 = vpop.eup %3093  ;;  %v2892_v1 = vmul.f32 -1.442695, %v2164_v6  ;;  %v2208_v29 = vadd.f32 1.0, %v3092_v15  ;;  %3107 = vrcp.f32 %v2183_v16 }
 0x23a   : > { %v2184_v41 = vadd.f32 1.0, %v3094_v24 }
 0x23c   : > { %v2165_v35 = vpop.trf.xlu0  ;;  %v3096_v9 = vpop.eup %3095 }
 0x23d   : > { %v3098_v31 = vpop.eup %3097  ;;  %v2893_v33 = vmul.f32 -1.442695, %v2165_v35  ;;  %v2209_v8 = vadd.f32 1.0, %v3096_v9 }
 0x23e   : > { %v2185_v34 = vadd.f32 1.0, %v3098_v31 }
 0x240   : > { %v2166_v27 = vpop.trf.xlu0  ;;  %v3100_v36 = vpop.eup %3099 }
 0x241   : > { %v3102_v45 = vpop.eup %3101  ;;  %v2894_v37 = vmul.f32 -1.442695, %v2166_v27  ;;  %v2210_v47 = vadd.f32 1.0, %v3100_v36 }
 0x242   : > { %v2186_v14 = vadd.f32 1.0, %v3102_v45 }
 0x244   : > { %v2167_v12 = vpop.trf.xlu0  ;;  %v3104_v17 = vpop.eup %3103 }
 0x245   : > { %3109 = vtanh.f32 %v2167_v12  ;;  %v3106_v43 = vpop.eup %3105  ;;  %v2231_v49 = vadd.f32 1.0, %v3104_v17 }
 0x246   : > { %3111 = vpow2.f32 %v2892_v1  ;;  %v3108_v50 = vpop.eup %3107  ;;  %v2251_v52 = vmul.f32 %v3106_v43, %v2247_v20 }
 0x247   : > { %3113 = vrcp.f32 %v2208_v29 }
 0x248   : > { %3115 = vrcp.f32 %v2184_v41  ;;  %v2168_v13 = vpop.trf.xlu0 }
 0x249   : > { %3117 = vtanh.f32 %v2168_v13 }
 0x24a   : > { %3119 = vpow2.f32 %v2893_v33 }
 0x24b   : > { %3121 = vrcp.f32 %v2209_v8 }
 0x24c   : > { %3123 = vrcp.f32 %v2185_v34  ;;  %v2169_v42 = vpop.trf.xlu0 }
 0x24d   : > { %3125 = vtanh.f32 %v2169_v42 }
 0x24e   : > { %3127 = vpow2.f32 %v2894_v37 }
 0x24f   : > { %3129 = vrcp.f32 %v2210_v47 }
 0x250   : > { %3131 = vrcp.f32 %v2186_v14  ;;  %v2170_v48 = vpop.trf.xlu0 }
 0x251   : > { %3133 = vtanh.f32 %v2170_v48 }
 0x252   : > { %v3110_v51 = vpop.eup %3109  ;;  %3135 = vrcp.f32 %v2231_v49 }
 0x253   : > { %v3112_v26 = vpop.eup %3111  ;;  %v2255_v62 = vmul.f32 %v3110_v51, %v3108_v50 }
 0x254   : > { %v3114_v55 = vpop.eup %3113  ;;  %v2232_v0 = vadd.f32 1.0, %v3112_v26 }
 0x255   : > { %v3116_v58 = vpop.eup %3115  ;;  %v2259_v60 = vadd.f32 %v2255_v62, %v2251_v52  ;;  %v2252_v46 = vmul.f32 %v3114_v55, %v2248_v32 }
 0x256   : > { %v3118_v39 = vpop.eup %3117 }
 0x257   : > { %v3120_v2 = vpop.eup %3119  ;;  %3137 = vtanh.f32 %v2259_v60  ;;  %2275 = vst [vmem:[%s3895_s15] sm:$0xff] %v2259_v60  ;;  %v2256_v10 = vmul.f32 %v3118_v39, %v3116_v58 }
 0x258   : > { %v3122_v11 = vpop.eup %3121  ;;  %3139 = vrcp.f32 %v2232_v0  ;;  %v2233_v38 = vadd.f32 1.0, %v3120_v2 }
 0x259   : > { %v3124_v30 = vpop.eup %3123  ;;  %v2260_v23 = vadd.f32 %v2256_v10, %v2252_v46  ;;  %v2253_v61 = vmul.f32 %v3122_v11, %v2249_v54 }
 0x25a   : > { %v3126_v19 = vpop.eup %3125 }
 0x25b   : > { %v3128_v56 = vpop.eup %3127  ;;  %3141 = vtanh.f32 %v2260_v23  ;;  %2276 = vst [vmem:[%s3895_s15 + $0x8] sm:$0xff] %v2260_v23  ;;  %v2257_v28 = vmul.f32 %v3126_v19, %v3124_v30 }
 0x25c   : > { %v3130_v18 = vpop.eup %3129  ;;  %3143 = vrcp.f32 %v2233_v38  ;;  %v2234_v53 = vadd.f32 1.0, %v3128_v56 }
 0x25d   : > { %v3132_v5 = vpop.eup %3131  ;;  %v2261_v4 = vadd.f32 %v2257_v28, %v2253_v61  ;;  %v2254_v44 = vmul.f32 %v3130_v18, %v2250_v57 }
 0x25e   : > { %v3134_v40 = vpop.eup %3133 }
 0x25f   : > { %3145 = vtanh.f32 %v2261_v4  ;;  %2277 = vst [vmem:[%s3895_s15 + $0x10] sm:$0xff] %v2261_v4  ;;  %v2258_v21 = vmul.f32 %v3134_v40, %v3132_v5  ;;  %v3136_v3 = vpop.eup %3135 }
 0x260   : > { %3147 = vrcp.f32 %v2234_v53 }
 0x261   : > { %v2262_v63 = vadd.f32 %v2258_v21, %v2254_v44 }
 0x263   : > { %3149 = vtanh.f32 %v2262_v63  ;;  %2278 = vst [vmem:[%s3895_s15 + $0x18] sm:$0xff] %v2262_v63 }
 0x264   : > { %v3138_v6 = vpop.eup %3137 }
 0x265   : > { %v2267_v22 = vmul.f32 %v3138_v6, %v3136_v3  ;;  %v3140_v35 = vpop.eup %3139 }
 0x267   : > { %2271 = vst [vmem:[%s301_s16] sm:$0xff] %v2267_v22 }
 0x268   : > { %v3142_v59 = vpop.eup %3141 }
 0x269   : > { %v2268_v25 = vmul.f32 %v3142_v59, %v3140_v35  ;;  %v3144_v7 = vpop.eup %3143 }
 0x26b   : > { %2272 = vst [vmem:[%s301_s16 + $0x8] sm:$0xff] %v2268_v25 }
 0x26c   : > { %v3146_v15 = vpop.eup %3145 }
 0x26d   : > { %v2269_v16 = vmul.f32 %v3146_v15, %v3144_v7  ;;  %v3148_v27 = vpop.eup %3147 }
 0x26e   : > { %v2328_v29 = vld [vmem:[%s301_s16] sm:$0xff] (%p3286_p6) }
 0x26f   : > { %2273 = vst [vmem:[%s301_s16 + $0x10] sm:$0xff] %v2269_v16  ;;  %2289 = sbr.rel (!%p3286_p6) target bundleno = 636 (0x27c), region = 78  ;;  %2329 = vst [vmem:[%s2293_s9] sm:$0xff] (%p3286_p6), %v2328_v29 }
 0x270   : > { %v3150_v24 = vpop.eup %3149 }
 0x271   : > { %v2270_v1 = vmul.f32 %v3150_v24, %v3148_v27 }
 0x272   : > { %v2330_v9 = vld [vmem:[%s301_s16 + $0x8] sm:$0xff] (%p3286_p6) }
 0x273   : > { %2274 = vst [vmem:[%s301_s16 + $0x18] sm:$0xff] %v2270_v1  ;;  %2331 = vst [vmem:[%s2293_s9 + $0x10] sm:$0xff] (%p3286_p6), %v2330_v9 }
 0x276   : > { %v2332_v41 = vld [vmem:[%s301_s16 + $0x10] sm:$0xff] }
 0x277   : > { %2333 = vst [vmem:[%s2293_s9 + $0x20] sm:$0xff] %v2332_v41 }
 0x27a   : > { %v2334_v12 = vld [vmem:[%s301_s16 + $0x18] sm:$0xff] }
 0x27b   : > { %2335 = vst [vmem:[%s2293_s9 + $0x30] sm:$0xff] %v2334_v12 }
 0x27c PF: > { %2341 = sbr.rel (!%p3286_p6) target bundleno = 642 (0x282), region = 116  ;;  %s2899_s10 = sshll.u32 (%p3286_p6), %s3193_s21, 3  ;;  %v2380_v31 = vld [vmem:[%s3895_s15] sm:$0xff] (%p3286_p6)  ;;  %v2382_v33 = vld [vmem:[%s3895_s15 + $0x8] sm:$0xff] (%p3286_p6)  ;;  %v2384_v8 = vld [vmem:[%s3895_s15 + $0x10] sm:$0xff] (%p3286_p6) }
 0x27d   : > { %s2343_s11 = sadd.s32 (%p3286_p6), %s3189_s20, %s2899_s10  ;;  %v2386_v36 = vld [vmem:[%s3895_s15 + $0x18] sm:$0xff] (%p3286_p6) }
 0x27e   : > { %s2900_s12 = sshll.u32 (%p3286_p6), %s2343_s11, 3 }
 0x27f   : > { %s2345_s14 = scalar_lea.vmem (%p3286_p6), %s3948_s5, %s2900_s12 }
 0x280   : > { %2381 = vst [vmem:[%s2345_s14] sm:$0xff] (%p3286_p6), %v2380_v31  ;;  %2383 = vst [vmem:[%s2345_s14 + $0x10] sm:$0xff] (%p3286_p6), %v2382_v33 }
 0x281   : > { %2385 = vst [vmem:[%s2345_s14 + $0x20] sm:$0xff] %v2384_v8  ;;  %2387 = vst [vmem:[%s2345_s14 + $0x30] sm:$0xff] %v2386_v36 }
 0x282 PF: > { %s16_s24 = sadd.s32 1, %s3205_s24   ;;  %s3950_s18 = smov %s3185_s19 }
 0x283   : > { %p13_p13 = scmp.ge.s32.totalorder %s16_s24, 6   ;;  %s3951_s19 = smov %s3294_s8 }
 0x284   : > { %s3952_s20 = smov %s3197_s22  ;;  %s3953_s21 = smov %s3201_s23 }
 0x285   : > { %s3954_s22 = smov %s3957_s25  ;;  %s3955_s23 = smov %s3961_s26 }
 0x286   :  { %15 = sbr.rel (!%p13_p13) target bundleno = 4 (0x4), region = 209 }

</bundles_post_ra>
